<compile_context>
chip_gen: v6e
topology: v6e:2x2x1
jax: 0.10.0
libtpu: 0.0.40
codegen_flags: <defaults>
</compile_context>

<pallas_src>
import functools

import jax
import jax.numpy as jnp
from jax import lax
from jax.experimental import pallas as pl
from jax.experimental.pallas import tpu as pltpu

EPS = 1e-5


def _residual_block_kernel(x_ref, mask_ref, pack_ref, out_ref, *, N, C, H, W):
    """Residual block in a lane-dense (C, flat-padded-spatial) layout.

    x_ref    : (C, Mp + 4*margin)  zero-padded, spatially flattened input
    mask_ref : (1, E)              1.0 at real (non-padding) positions of the
                                   margin-extended flat domain, E = Mp+2*margin
    pack_ref : (C, 18*C + 8)       [wm1 | wm2 | g1 be1 g2 be2 a | 0...]
    out_ref  : (C, Mp)             full padded slab; wrapper keeps the interior
    """
    Hp, Wp = H + 2, W + 2
    Mp = N * Hp * Wp
    margin = Wp + 1                      # max |tap offset| in the flat layout
    E = Mp + 2 * margin                  # extended domain conv1 is computed on
    inv_cnt = 1.0 / float(N * H * W)

    x_ext = x_ref[...]                   # (C, Mp + 4*margin)
    mask_e = mask_ref[...]               # (1, E)
    pack = pack_ref[...]                 # (C, 18*C + 8)

    wm1 = pack[:, 0:9 * C]               # (C_out, 9*C_in), tap-major columns
    wm2 = pack[:, 9 * C:18 * C]
    off = 18 * C
    g1, be1 = pack[:, off:off + 1], pack[:, off + 1:off + 2]
    g2, be2 = pack[:, off + 2:off + 3], pack[:, off + 3:off + 4]
    a_col = pack[:, off + 4:off + 5]     # PReLU slope (same value every row)

    # Hoisted mask broadcasts (reused several times; no broadcast re-emission).
    m_e = jnp.broadcast_to(mask_e, (C, E))                             # ext dom
    m_i = jnp.broadcast_to(mask_e[:, margin:margin + Mp], (C, Mp))     # flat dom

    def conv3x3(operand, out_len, wmat):
        """Per-tap accumulation; no im2col materialization.

        operand columns [margin + p] correspond to output position p, so the
        tap at spatial offset (dh, dw) reads operand[:, margin+dh*Wp+dw + p].
        """
        acc = None
        t = 0
        for dh in (-1, 0, 1):
            for dw in (-1, 0, 1):
                ofs = margin + dh * Wp + dw
                op = operand[:, ofs:ofs + out_len]          # (C_in, out_len)
                w_t = wmat[:, t * C:(t + 1) * C]            # (C_out, C_in)
                term = jnp.dot(w_t, op, preferred_element_type=jnp.float32)
                acc = term if acc is None else acc + term
                t += 1
        return acc

    def batchnorm(y, m, gamma, beta):
        # Training-mode BN, single fused stats pass over masked positions:
        # mean = E[y], var = E[y^2] - mean^2 (biased), over interior only.
        ym = y * m
        s1 = jnp.sum(ym, axis=1, keepdims=True)
        s2 = jnp.sum(ym * y, axis=1, keepdims=True)          # m in {0,1}
        mean = s1 * inv_cnt
        var = s2 * inv_cnt - mean * mean
        inv = lax.rsqrt(var + EPS)
        return (y - mean) * (inv * gamma) + beta

    # ---- conv block 1: conv -> BN -> PReLU (conv bias cancelled by BN) ----
    # Computed over the margin-extended domain E so that conv2's tap reads are
    # in-bounds slices of y1 (no re-extension / concat needed).
    y1 = conv3x3(x_ext, E, wm1)                              # (C, E)
    y1 = batchnorm(y1, m_e, g1, be1)
    y1 = jnp.where(y1 > 0, y1, a_col * y1)                   # PReLU
    y1 = y1 * m_e             # zero borders/margins => zero padding for conv2

    # ---- conv block 2: conv -> BN, then residual add ----
    y2 = conv3x3(y1, Mp, wm2)                                # (C, Mp)
    y2 = batchnorm(y2, m_i, g2, be2)

    x_res = x_ext[:, 2 * margin:2 * margin + Mp]             # padding cols = 0
    out_ref[...] = y2 + x_res


def residual_block(x_nchw, params):
    """x_nchw: (N, C, H, W) float32.  Returns (N, C, H, W) float32."""
    w1, _b1, g1, be1, a, w2, _b2, g2, be2 = params
    # _b1/_b2 (conv biases) are intentionally not passed to the kernel: a bias
    # immediately followed by training-mode BatchNorm is cancelled exactly.
    N, C, H, W = x_nchw.shape
    Hp, Wp = H + 2, W + 2
    Mp = N * Hp * Wp
    margin = Wp + 1

    xf = x_nchw.astype(jnp.float32)
    # TODO(synk): when chaining residual blocks, keep activations in this
    # (C, flat-padded) layout across blocks so this transpose/pad round-trip
    # is paid once per network instead of per block.
    x_pad = jnp.pad(jnp.transpose(xf, (1, 0, 2, 3)),
                    ((0, 0), (0, 0), (1, 1), (1, 1)))        # (C, N, Hp, Wp)
    x_ext = jnp.pad(x_pad.reshape(C, Mp),
                    ((0, 0), (2 * margin, 2 * margin)))      # (C, Mp + 4*margin)

    # Interior (non-padding) mask on the margin-extended flat domain (1, E).
    hh = jnp.arange(Hp)
    ww = jnp.arange(Wp)
    m2d = ((hh[:, None] >= 1) & (hh[:, None] <= H)
           & (ww[None, :] >= 1) & (ww[None, :] <= W)).astype(jnp.float32)
    mask = jnp.tile(m2d.reshape(1, Hp * Wp), (1, N))         # (1, Mp)
    mask_ext = jnp.pad(mask, ((0, 0), (margin, margin)))     # (1, E)

    # Pack everything the kernel needs (besides activations) into ONE array:
    # conv weights as (C_out, 9*C_in) matrices + BN affine params + PReLU slope.
    wm1 = w1.reshape(9 * C, C).T
    wm2 = w2.reshape(9 * C, C).T
    a_col = jnp.broadcast_to(jnp.asarray(a, jnp.float32), (C,))
    pcols = jnp.stack([g1, be1, g2, be2, a_col], axis=1)     # (C, 5)
    pack = jnp.concatenate(
        [wm1, wm2, pcols, jnp.zeros((C, 3), jnp.float32)], axis=1)  # (C, 18C+8)

    kernel = functools.partial(_residual_block_kernel, N=N, C=C, H=H, W=W)
    vmem = pl.BlockSpec(memory_space=pltpu.MemorySpace.VMEM)
    out_flat = pl.pallas_call(
        kernel,
        out_shape=jax.ShapeDtypeStruct((C, Mp), jnp.float32),
        in_specs=[vmem] * 3,
        out_specs=vmem,
    )(x_ext, mask_ext, pack)

    # Keep the interior and go back to NCHW.
    out = out_flat.reshape(C, N, Hp, Wp)[:, :, 1:H + 1, 1:W + 1]
    return jnp.transpose(out, (1, 0, 2, 3))


def make_params(key, n_channels=4, kernel_size=3):
    k1, k2, k3, k4 = jax.random.split(key, 4)
    C, K = n_channels, kernel_size
    # conv weights stored HWIO (kh, kw, in, out)
    w1 = jax.random.normal(k1, (K, K, C, C), jnp.float32) * 0.1
    b1 = jax.random.normal(k2, (C,), jnp.float32) * 0.1
    w2 = jax.random.normal(k3, (K, K, C, C), jnp.float32) * 0.1
    b2 = jax.random.normal(k4, (C,), jnp.float32) * 0.1
    g1 = jnp.ones((C,), jnp.float32)    # BN1 weight
    be1 = jnp.zeros((C,), jnp.float32)  # BN1 bias
    g2 = jnp.ones((C,), jnp.float32)    # BN2 weight
    be2 = jnp.zeros((C,), jnp.float32)  # BN2 bias
    a = jnp.array(0.25, jnp.float32)    # PReLU slope (PyTorch default init)
    return (w1, b1, g1, be1, a, w2, b2, g2, be2)


def _reference(x_nchw, params):
    """Pure-JAX reference mirroring the PyTorch forward (training-mode BN).

    Note: keeps the conv biases (as nn.Conv2d does) — they are cancelled by
    the BN mean subtraction, which the kernel exploits by omitting them.
    """
    w1, b1, g1, be1, a, w2, b2, g2, be2 = params

    def conv(x, w_hwio, b):
        w_oihw = jnp.transpose(w_hwio, (3, 2, 0, 1))
        y = lax.conv_general_dilated(
            x, w_oihw, window_strides=(1, 1), padding="SAME",
            dimension_numbers=("NCHW", "OIHW", "NCHW"))
        return y + b[None, :, None, None]

    def bn(y, gamma, beta):
        mean = jnp.mean(y, axis=(0, 2, 3), keepdims=True)
        var = jnp.mean((y - mean) ** 2, axis=(0, 2, 3), keepdims=True)
        return (y - mean) * lax.rsqrt(var + EPS) * gamma[None, :, None, None] \
            + beta[None, :, None, None]

    y = conv(x_nchw, w1, b1)
    y = bn(y, g1, be1)
    y = jnp.where(y > 0, y, a * y)
    y = conv(y, w2, b2)
    y = bn(y, g2, be2)
    return y + x_nchw


if __name__ == "__main__":
    key = jax.random.PRNGKey(0)
    kx, kp = jax.random.split(key)

    N, C, H, W = 2, 4, 16, 16
    x = jax.random.normal(kx, (N, C, H, W), jnp.float32)
    params = make_params(kp, n_channels=C, kernel_size=3)

    out = jax.jit(residual_block)(x, params)
    out = jax.block_until_ready(out)

    ref = _reference(x, params)
    assert out.shape == (N, C, H, W)
    assert jnp.max(jnp.abs(out - ref)) < 2e-4, "mismatch vs reference"

    print("KERNEL_OK")
</pallas_src>

<mosaic_0001>
module attributes {stable_mosaic.version = 11 : i64} {
  func.func @_residual_block_kernel(%arg0: memref<4x724xf32, #tpu.memory_space<vmem>>, %arg1: memref<1x686xf32, #tpu.memory_space<vmem>>, %arg2: memref<4x80xf32, #tpu.memory_space<vmem>>, %arg3: memref<4x648xf32, #tpu.memory_space<vmem>>) attributes {dimension_semantics = [], scalar_prefetch = 0 : i64, scratch_operands = 0 : i64, tpu.core_type = #tpu.core_type<tc>} {
    %c0 = arith.constant 0 : index
    %c0_0 = arith.constant 0 : index
    %0 = vector.load %arg0[%c0, %c0_0] : memref<4x724xf32, #tpu.memory_space<vmem>>, vector<4x724xf32>
    %c0_1 = arith.constant 0 : index
    %c0_2 = arith.constant 0 : index
    %1 = vector.load %arg1[%c0_1, %c0_2] : memref<1x686xf32, #tpu.memory_space<vmem>>, vector<1x686xf32>
    %c0_3 = arith.constant 0 : index
    %c0_4 = arith.constant 0 : index
    %2 = vector.load %arg2[%c0_3, %c0_4] : memref<4x80xf32, #tpu.memory_space<vmem>>, vector<4x80xf32>
    %3 = vector.extract_strided_slice %2 {offsets = [0, 0], sizes = [4, 36], strides = [1, 1]} : vector<4x80xf32> to vector<4x36xf32>
    %4 = vector.extract_strided_slice %2 {offsets = [0, 36], sizes = [4, 36], strides = [1, 1]} : vector<4x80xf32> to vector<4x36xf32>
    %5 = vector.extract_strided_slice %2 {offsets = [0, 72], sizes = [4, 1], strides = [1, 1]} : vector<4x80xf32> to vector<4x1xf32>
    %6 = vector.extract_strided_slice %2 {offsets = [0, 73], sizes = [4, 1], strides = [1, 1]} : vector<4x80xf32> to vector<4x1xf32>
    %7 = vector.extract_strided_slice %2 {offsets = [0, 74], sizes = [4, 1], strides = [1, 1]} : vector<4x80xf32> to vector<4x1xf32>
    %8 = vector.extract_strided_slice %2 {offsets = [0, 75], sizes = [4, 1], strides = [1, 1]} : vector<4x80xf32> to vector<4x1xf32>
    %9 = vector.extract_strided_slice %2 {offsets = [0, 76], sizes = [4, 1], strides = [1, 1]} : vector<4x80xf32> to vector<4x1xf32>
    %10 = vector.shape_cast %1 : vector<1x686xf32> to vector<1x686xf32>
    %11 = vector.broadcast %10 : vector<1x686xf32> to vector<4x686xf32>
    %12 = vector.extract_strided_slice %1 {offsets = [0, 19], sizes = [1, 648], strides = [1, 1]} : vector<1x686xf32> to vector<1x648xf32>
    %13 = vector.shape_cast %12 : vector<1x648xf32> to vector<1x648xf32>
    %14 = vector.broadcast %13 : vector<1x648xf32> to vector<4x648xf32>
    %15 = vector.extract_strided_slice %0 {offsets = [0, 0], sizes = [4, 686], strides = [1, 1]} : vector<4x724xf32> to vector<4x686xf32>
    %16 = vector.extract_strided_slice %3 {offsets = [0, 0], sizes = [4, 4], strides = [1, 1]} : vector<4x36xf32> to vector<4x4xf32>
    %cst = arith.constant dense<0.000000e+00> : vector<4x686xf32>
    %17 = tpu.matmul %16, %15, %cst {dimension_numbers = #tpu.dot_dimension_numbers<[1], [0], [0], [1], [0, 0, 1, 1], [], []>} : vector<4x4xf32>, vector<4x686xf32>, vector<4x686xf32> -> vector<4x686xf32>
    %18 = vector.extract_strided_slice %0 {offsets = [0, 1], sizes = [4, 686], strides = [1, 1]} : vector<4x724xf32> to vector<4x686xf32>
    %19 = vector.extract_strided_slice %3 {offsets = [0, 4], sizes = [4, 4], strides = [1, 1]} : vector<4x36xf32> to vector<4x4xf32>
    %cst_5 = arith.constant dense<0.000000e+00> : vector<4x686xf32>
    %20 = tpu.matmul %19, %18, %cst_5 {dimension_numbers = #tpu.dot_dimension_numbers<[1], [0], [0], [1], [0, 0, 1, 1], [], []>} : vector<4x4xf32>, vector<4x686xf32>, vector<4x686xf32> -> vector<4x686xf32>
    %21 = arith.addf %17, %20 : vector<4x686xf32>
    %22 = vector.extract_strided_slice %0 {offsets = [0, 2], sizes = [4, 686], strides = [1, 1]} : vector<4x724xf32> to vector<4x686xf32>
    %23 = vector.extract_strided_slice %3 {offsets = [0, 8], sizes = [4, 4], strides = [1, 1]} : vector<4x36xf32> to vector<4x4xf32>
    %cst_6 = arith.constant dense<0.000000e+00> : vector<4x686xf32>
    %24 = tpu.matmul %23, %22, %cst_6 {dimension_numbers = #tpu.dot_dimension_numbers<[1], [0], [0], [1], [0, 0, 1, 1], [], []>} : vector<4x4xf32>, vector<4x686xf32>, vector<4x686xf32> -> vector<4x686xf32>
    %25 = arith.addf %21, %24 : vector<4x686xf32>
    %26 = vector.extract_strided_slice %0 {offsets = [0, 18], sizes = [4, 686], strides = [1, 1]} : vector<4x724xf32> to vector<4x686xf32>
    %27 = vector.extract_strided_slice %3 {offsets = [0, 12], sizes = [4, 4], strides = [1, 1]} : vector<4x36xf32> to vector<4x4xf32>
    %cst_7 = arith.constant dense<0.000000e+00> : vector<4x686xf32>
    %28 = tpu.matmul %27, %26, %cst_7 {dimension_numbers = #tpu.dot_dimension_numbers<[1], [0], [0], [1], [0, 0, 1, 1], [], []>} : vector<4x4xf32>, vector<4x686xf32>, vector<4x686xf32> -> vector<4x686xf32>
    %29 = arith.addf %25, %28 : vector<4x686xf32>
    %30 = vector.extract_strided_slice %0 {offsets = [0, 19], sizes = [4, 686], strides = [1, 1]} : vector<4x724xf32> to vector<4x686xf32>
    %31 = vector.extract_strided_slice %3 {offsets = [0, 16], sizes = [4, 4], strides = [1, 1]} : vector<4x36xf32> to vector<4x4xf32>
    %cst_8 = arith.constant dense<0.000000e+00> : vector<4x686xf32>
    %32 = tpu.matmul %31, %30, %cst_8 {dimension_numbers = #tpu.dot_dimension_numbers<[1], [0], [0], [1], [0, 0, 1, 1], [], []>} : vector<4x4xf32>, vector<4x686xf32>, vector<4x686xf32> -> vector<4x686xf32>
    %33 = arith.addf %29, %32 : vector<4x686xf32>
    %34 = vector.extract_strided_slice %0 {offsets = [0, 20], sizes = [4, 686], strides = [1, 1]} : vector<4x724xf32> to vector<4x686xf32>
    %35 = vector.extract_strided_slice %3 {offsets = [0, 20], sizes = [4, 4], strides = [1, 1]} : vector<4x36xf32> to vector<4x4xf32>
    %cst_9 = arith.constant dense<0.000000e+00> : vector<4x686xf32>
    %36 = tpu.matmul %35, %34, %cst_9 {dimension_numbers = #tpu.dot_dimension_numbers<[1], [0], [0], [1], [0, 0, 1, 1], [], []>} : vector<4x4xf32>, vector<4x686xf32>, vector<4x686xf32> -> vector<4x686xf32>
    %37 = arith.addf %33, %36 : vector<4x686xf32>
    %38 = vector.extract_strided_slice %0 {offsets = [0, 36], sizes = [4, 686], strides = [1, 1]} : vector<4x724xf32> to vector<4x686xf32>
    %39 = vector.extract_strided_slice %3 {offsets = [0, 24], sizes = [4, 4], strides = [1, 1]} : vector<4x36xf32> to vector<4x4xf32>
    %cst_10 = arith.constant dense<0.000000e+00> : vector<4x686xf32>
    %40 = tpu.matmul %39, %38, %cst_10 {dimension_numbers = #tpu.dot_dimension_numbers<[1], [0], [0], [1], [0, 0, 1, 1], [], []>} : vector<4x4xf32>, vector<4x686xf32>, vector<4x686xf32> -> vector<4x686xf32>
    %41 = arith.addf %37, %40 : vector<4x686xf32>
    %42 = vector.extract_strided_slice %0 {offsets = [0, 37], sizes = [4, 686], strides = [1, 1]} : vector<4x724xf32> to vector<4x686xf32>
    %43 = vector.extract_strided_slice %3 {offsets = [0, 28], sizes = [4, 4], strides = [1, 1]} : vector<4x36xf32> to vector<4x4xf32>
    %cst_11 = arith.constant dense<0.000000e+00> : vector<4x686xf32>
    %44 = tpu.matmul %43, %42, %cst_11 {dimension_numbers = #tpu.dot_dimension_numbers<[1], [0], [0], [1], [0, 0, 1, 1], [], []>} : vector<4x4xf32>, vector<4x686xf32>, vector<4x686xf32> -> vector<4x686xf32>
    %45 = arith.addf %41, %44 : vector<4x686xf32>
    %46 = vector.extract_strided_slice %0 {offsets = [0, 38], sizes = [4, 686], strides = [1, 1]} : vector<4x724xf32> to vector<4x686xf32>
    %47 = vector.extract_strided_slice %3 {offsets = [0, 32], sizes = [4, 4], strides = [1, 1]} : vector<4x36xf32> to vector<4x4xf32>
    %cst_12 = arith.constant dense<0.000000e+00> : vector<4x686xf32>
    %48 = tpu.matmul %47, %46, %cst_12 {dimension_numbers = #tpu.dot_dimension_numbers<[1], [0], [0], [1], [0, 0, 1, 1], [], []>} : vector<4x4xf32>, vector<4x686xf32>, vector<4x686xf32> -> vector<4x686xf32>
    %49 = arith.addf %45, %48 : vector<4x686xf32>
    %50 = arith.mulf %49, %11 : vector<4x686xf32>
    %cst_13 = arith.constant dense<0.000000e+00> : vector<4xf32>
    %51 = vector.multi_reduction <add>, %50, %cst_13 [1] : vector<4x686xf32> to vector<4xf32>
    %52 = vector.shape_cast %51 : vector<4xf32> to vector<4x1xf32>
    %53 = arith.mulf %50, %49 : vector<4x686xf32>
    %cst_14 = arith.constant dense<0.000000e+00> : vector<4xf32>
    %54 = vector.multi_reduction <add>, %53, %cst_14 [1] : vector<4x686xf32> to vector<4xf32>
    %55 = vector.shape_cast %54 : vector<4xf32> to vector<4x1xf32>
    %cst_15 = arith.constant 0.001953125 : f32
    %56 = vector.broadcast %cst_15 : f32 to vector<4x1xf32>
    %57 = arith.mulf %52, %56 : vector<4x1xf32>
    %cst_16 = arith.constant 0.001953125 : f32
    %58 = vector.broadcast %cst_16 : f32 to vector<4x1xf32>
    %59 = arith.mulf %55, %58 : vector<4x1xf32>
    %60 = arith.mulf %57, %57 : vector<4x1xf32>
    %61 = arith.subf %59, %60 : vector<4x1xf32>
    %cst_17 = arith.constant 9.99999974E-6 : f32
    %62 = vector.broadcast %cst_17 : f32 to vector<4x1xf32>
    %63 = arith.addf %61, %62 : vector<4x1xf32>
    %64 = math.rsqrt %63 : vector<4x1xf32>
    %65 = vector.broadcast %57 : vector<4x1xf32> to vector<4x686xf32>
    %66 = arith.subf %49, %65 : vector<4x686xf32>
    %67 = arith.mulf %64, %5 : vector<4x1xf32>
    %68 = vector.broadcast %67 : vector<4x1xf32> to vector<4x686xf32>
    %69 = arith.mulf %66, %68 : vector<4x686xf32>
    %70 = vector.broadcast %6 : vector<4x1xf32> to vector<4x686xf32>
    %71 = arith.addf %69, %70 : vector<4x686xf32>
    %cst_18 = arith.constant 0.000000e+00 : f32
    %72 = vector.broadcast %cst_18 : f32 to vector<4x686xf32>
    %73 = arith.cmpf ogt, %71, %72 : vector<4x686xf32>
    %74 = vector.broadcast %9 : vector<4x1xf32> to vector<4x686xf32>
    %75 = arith.mulf %74, %71 : vector<4x686xf32>
    %76 = arith.select %73, %71, %75 : vector<4x686xi1>, vector<4x686xf32>
    %77 = arith.mulf %76, %11 : vector<4x686xf32>
    %78 = vector.extract_strided_slice %77 {offsets = [0, 0], sizes = [4, 648], strides = [1, 1]} : vector<4x686xf32> to vector<4x648xf32>
    %79 = vector.extract_strided_slice %4 {offsets = [0, 0], sizes = [4, 4], strides = [1, 1]} : vector<4x36xf32> to vector<4x4xf32>
    %cst_19 = arith.constant dense<0.000000e+00> : vector<4x648xf32>
    %80 = tpu.matmul %79, %78, %cst_19 {dimension_numbers = #tpu.dot_dimension_numbers<[1], [0], [0], [1], [0, 0, 1, 1], [], []>} : vector<4x4xf32>, vector<4x648xf32>, vector<4x648xf32> -> vector<4x648xf32>
    %81 = vector.extract_strided_slice %77 {offsets = [0, 1], sizes = [4, 648], strides = [1, 1]} : vector<4x686xf32> to vector<4x648xf32>
    %82 = vector.extract_strided_slice %4 {offsets = [0, 4], sizes = [4, 4], strides = [1, 1]} : vector<4x36xf32> to vector<4x4xf32>
    %cst_20 = arith.constant dense<0.000000e+00> : vector<4x648xf32>
    %83 = tpu.matmul %82, %81, %cst_20 {dimension_numbers = #tpu.dot_dimension_numbers<[1], [0], [0], [1], [0, 0, 1, 1], [], []>} : vector<4x4xf32>, vector<4x648xf32>, vector<4x648xf32> -> vector<4x648xf32>
    %84 = arith.addf %80, %83 : vector<4x648xf32>
    %85 = vector.extract_strided_slice %77 {offsets = [0, 2], sizes = [4, 648], strides = [1, 1]} : vector<4x686xf32> to vector<4x648xf32>
    %86 = vector.extract_strided_slice %4 {offsets = [0, 8], sizes = [4, 4], strides = [1, 1]} : vector<4x36xf32> to vector<4x4xf32>
    %cst_21 = arith.constant dense<0.000000e+00> : vector<4x648xf32>
    %87 = tpu.matmul %86, %85, %cst_21 {dimension_numbers = #tpu.dot_dimension_numbers<[1], [0], [0], [1], [0, 0, 1, 1], [], []>} : vector<4x4xf32>, vector<4x648xf32>, vector<4x648xf32> -> vector<4x648xf32>
    %88 = arith.addf %84, %87 : vector<4x648xf32>
    %89 = vector.extract_strided_slice %77 {offsets = [0, 18], sizes = [4, 648], strides = [1, 1]} : vector<4x686xf32> to vector<4x648xf32>
    %90 = vector.extract_strided_slice %4 {offsets = [0, 12], sizes = [4, 4], strides = [1, 1]} : vector<4x36xf32> to vector<4x4xf32>
    %cst_22 = arith.constant dense<0.000000e+00> : vector<4x648xf32>
    %91 = tpu.matmul %90, %89, %cst_22 {dimension_numbers = #tpu.dot_dimension_numbers<[1], [0], [0], [1], [0, 0, 1, 1], [], []>} : vector<4x4xf32>, vector<4x648xf32>, vector<4x648xf32> -> vector<4x648xf32>
    %92 = arith.addf %88, %91 : vector<4x648xf32>
    %93 = vector.extract_strided_slice %77 {offsets = [0, 19], sizes = [4, 648], strides = [1, 1]} : vector<4x686xf32> to vector<4x648xf32>
    %94 = vector.extract_strided_slice %4 {offsets = [0, 16], sizes = [4, 4], strides = [1, 1]} : vector<4x36xf32> to vector<4x4xf32>
    %cst_23 = arith.constant dense<0.000000e+00> : vector<4x648xf32>
    %95 = tpu.matmul %94, %93, %cst_23 {dimension_numbers = #tpu.dot_dimension_numbers<[1], [0], [0], [1], [0, 0, 1, 1], [], []>} : vector<4x4xf32>, vector<4x648xf32>, vector<4x648xf32> -> vector<4x648xf32>
    %96 = arith.addf %92, %95 : vector<4x648xf32>
    %97 = vector.extract_strided_slice %77 {offsets = [0, 20], sizes = [4, 648], strides = [1, 1]} : vector<4x686xf32> to vector<4x648xf32>
    %98 = vector.extract_strided_slice %4 {offsets = [0, 20], sizes = [4, 4], strides = [1, 1]} : vector<4x36xf32> to vector<4x4xf32>
    %cst_24 = arith.constant dense<0.000000e+00> : vector<4x648xf32>
    %99 = tpu.matmul %98, %97, %cst_24 {dimension_numbers = #tpu.dot_dimension_numbers<[1], [0], [0], [1], [0, 0, 1, 1], [], []>} : vector<4x4xf32>, vector<4x648xf32>, vector<4x648xf32> -> vector<4x648xf32>
    %100 = arith.addf %96, %99 : vector<4x648xf32>
    %101 = vector.extract_strided_slice %77 {offsets = [0, 36], sizes = [4, 648], strides = [1, 1]} : vector<4x686xf32> to vector<4x648xf32>
    %102 = vector.extract_strided_slice %4 {offsets = [0, 24], sizes = [4, 4], strides = [1, 1]} : vector<4x36xf32> to vector<4x4xf32>
    %cst_25 = arith.constant dense<0.000000e+00> : vector<4x648xf32>
    %103 = tpu.matmul %102, %101, %cst_25 {dimension_numbers = #tpu.dot_dimension_numbers<[1], [0], [0], [1], [0, 0, 1, 1], [], []>} : vector<4x4xf32>, vector<4x648xf32>, vector<4x648xf32> -> vector<4x648xf32>
    %104 = arith.addf %100, %103 : vector<4x648xf32>
    %105 = vector.extract_strided_slice %77 {offsets = [0, 37], sizes = [4, 648], strides = [1, 1]} : vector<4x686xf32> to vector<4x648xf32>
    %106 = vector.extract_strided_slice %4 {offsets = [0, 28], sizes = [4, 4], strides = [1, 1]} : vector<4x36xf32> to vector<4x4xf32>
    %cst_26 = arith.constant dense<0.000000e+00> : vector<4x648xf32>
    %107 = tpu.matmul %106, %105, %cst_26 {dimension_numbers = #tpu.dot_dimension_numbers<[1], [0], [0], [1], [0, 0, 1, 1], [], []>} : vector<4x4xf32>, vector<4x648xf32>, vector<4x648xf32> -> vector<4x648xf32>
    %108 = arith.addf %104, %107 : vector<4x648xf32>
    %109 = vector.extract_strided_slice %77 {offsets = [0, 38], sizes = [4, 648], strides = [1, 1]} : vector<4x686xf32> to vector<4x648xf32>
    %110 = vector.extract_strided_slice %4 {offsets = [0, 32], sizes = [4, 4], strides = [1, 1]} : vector<4x36xf32> to vector<4x4xf32>
    %cst_27 = arith.constant dense<0.000000e+00> : vector<4x648xf32>
    %111 = tpu.matmul %110, %109, %cst_27 {dimension_numbers = #tpu.dot_dimension_numbers<[1], [0], [0], [1], [0, 0, 1, 1], [], []>} : vector<4x4xf32>, vector<4x648xf32>, vector<4x648xf32> -> vector<4x648xf32>
    %112 = arith.addf %108, %111 : vector<4x648xf32>
    %113 = arith.mulf %112, %14 : vector<4x648xf32>
    %cst_28 = arith.constant dense<0.000000e+00> : vector<4xf32>
    %114 = vector.multi_reduction <add>, %113, %cst_28 [1] : vector<4x648xf32> to vector<4xf32>
    %115 = vector.shape_cast %114 : vector<4xf32> to vector<4x1xf32>
    %116 = arith.mulf %113, %112 : vector<4x648xf32>
    %cst_29 = arith.constant dense<0.000000e+00> : vector<4xf32>
    %117 = vector.multi_reduction <add>, %116, %cst_29 [1] : vector<4x648xf32> to vector<4xf32>
    %118 = vector.shape_cast %117 : vector<4xf32> to vector<4x1xf32>
    %cst_30 = arith.constant 0.001953125 : f32
    %119 = vector.broadcast %cst_30 : f32 to vector<4x1xf32>
    %120 = arith.mulf %115, %119 : vector<4x1xf32>
    %cst_31 = arith.constant 0.001953125 : f32
    %121 = vector.broadcast %cst_31 : f32 to vector<4x1xf32>
    %122 = arith.mulf %118, %121 : vector<4x1xf32>
    %123 = arith.mulf %120, %120 : vector<4x1xf32>
    %124 = arith.subf %122, %123 : vector<4x1xf32>
    %cst_32 = arith.constant 9.99999974E-6 : f32
    %125 = vector.broadcast %cst_32 : f32 to vector<4x1xf32>
    %126 = arith.addf %124, %125 : vector<4x1xf32>
    %127 = math.rsqrt %126 : vector<4x1xf32>
    %128 = vector.broadcast %120 : vector<4x1xf32> to vector<4x648xf32>
    %129 = arith.subf %112, %128 : vector<4x648xf32>
    %130 = arith.mulf %127, %7 : vector<4x1xf32>
    %131 = vector.broadcast %130 : vector<4x1xf32> to vector<4x648xf32>
    %132 = arith.mulf %129, %131 : vector<4x648xf32>
    %133 = vector.broadcast %8 : vector<4x1xf32> to vector<4x648xf32>
    %134 = arith.addf %132, %133 : vector<4x648xf32>
    %135 = vector.extract_strided_slice %0 {offsets = [0, 38], sizes = [4, 648], strides = [1, 1]} : vector<4x724xf32> to vector<4x648xf32>
    %136 = arith.addf %134, %135 : vector<4x648xf32>
    %c0_33 = arith.constant 0 : index
    %c0_34 = arith.constant 0 : index
    %137 = vector.load %arg3[%c0_33, %c0_34] : memref<4x648xf32, #tpu.memory_space<vmem>>, vector<4x648xf32>
    tpu.vector_store %arg3[%c0_33, %c0_34], %136 {strides = array<i32>} : memref<4x648xf32, #tpu.memory_space<vmem>>, vector<4x648xf32>,
    return
  }
}

</mosaic_0001>

<bundles_post_ra>
// kernel: residual_block.1
= control target key start
LH: loop header
LB: loop body
LE: loop exit
PB: predicated region body
PF: predicated region fallthrough
CT: control target
= control target key end

     0   :  { %v5804_v2 = vmov 0.0   ;;  %s4985_s16 = smov 127   ;;  %s4986_s19 = smov 124   ;;  %vm71_vm0 = vcmask 1039360   ;;  %vm80_vm1 = vcmask 1043456   ;;  %vm77_vm2 = vcmask 31744   ;;  %s5800_s0 = inlined_call_operand.vmem [shape: f32[4,724], index: 0, kind: input, shape index: {}]   ;;  %s5801_s2 = inlined_call_operand.vmem [shape: f32[4,80], index: 2, kind: input, shape index: {}]   ;;  %s5802_s1 = inlined_call_operand.vmem [shape: f32[1,686], index: 1, kind: input, shape index: {}]   ;;  %s5803_s3 = inlined_call_operand.vmem [shape: f32[4,648], index: 3, kind: output, shape index: {}]  }
   0x1   :  { %v5036_v0 = vld [vmem:[%s5800_s0 + $0x8] sm:$0xff]  ;;  %v5041_v1 = vld [vmem:[%s5800_s0] sm:$0xff]  ;;  %157 = vmatprep.mubr.f32.mxu0 %v5804_v2  ;;  %228 = vmatprep.mubr.f32.mxu1 %v5804_v2  ;;  %v5068_v6 = vld [vmem:[%s5800_s0 + $0x10] sm:$0xff]  ;;  %s4987_s22 = smov 126   ;;  %s4988_s0 = smov 120   ;;  %vm547_vm3 = vcmask 1031168  }
   0x2   :  { %63 = vrot.lane.b32.xlu0 %v5036_v0, %s4985_s16  ;;  %59 = vrot.lane.b32.xlu1 %v5041_v1, %s4985_s16  ;;  %v5051_v3 = vcombine.high %v5041_v1, %v5041_v1  ;;  %v5056_v4 = vld [vmem:[%s5801_s2] sm:$0xf]  ;;  %v5063_v5 = vcombine.high %v5036_v0, %v5036_v0  ;;  %v5076_v7 = vcombine.high %v5068_v6, %v5068_v6  ;;  %s4989_s23 = smov 110   ;;  %s4990_s24 = smov 116   ;;  %vm800_vm4 = vcmask 900096  }
   0x3   :  { %s4991_s25 = smov 109   ;;  %s4992_s26 = smov 112   ;;  %vm1053_vm5 = vcmask 891904   ;;  %vm1306_vm6 = vcmask 883712   ;;  %vm1559_vm7 = vcmask 752640   ;;  %vm1812_vm8 = vcmask 744448  }
   0x4   :  { %s4993_s27 = smov 108   ;;  %s4994_s28 = smov 92   ;;  %vm2065_vm9 = vcmask 736256   ;;  %vm2319_vm10 = vcmask 371712  }
   0x5   :  { %s4995_s29 = smov 104   ;;  %s4996_s30 = smov 91  }
   0x6   :  { %51 = vrot.lane.b32.xlu1 %v5056_v4, %s4986_s19  ;;  %61 = vrot.lane.b32.xlu0 %v5051_v3, %s4985_s16  ;;  %s4997_s4 = smov 100   ;;  %s4998_s5 = smov 90  }
   0x7   :  { %s4999_s6 = smov 96   ;;  %s5004_s9 = smov 80  }
   0x8   :  { %s5005_s10 = smov 72   ;;  %s5006_s11 = smov 64  }
   0x9   :  { %s5007_s12 = smov 84   ;;  %s5008_s13 = smov 76  }
   0xa   :  { %67 = vrot.lane.b32.xlu1 %v5068_v6, %s4985_s16  ;;  %65 = vrot.lane.b32.xlu0 %v5063_v5, %s4985_s16  ;;  %s5009_s14 = smov 68   ;;  %s5010_s15 = smov 60  }
   0xe   :  { %537 = vrot.lane.b32.xlu1 %v5051_v3, %s4987_s22  ;;  %69 = vrot.lane.b32.xlu0 %v5076_v7, %s4985_s16 }
  0x12   :  { %535 = vrot.lane.b32.xlu1 %v5041_v1, %s4987_s22  ;;  %539 = vrot.lane.b32.xlu0 %v5036_v0, %s4987_s22 }
  0x16   :  { %541 = vrot.lane.b32.xlu1 %v5063_v5, %s4987_s22  ;;  %533 = vrot.lane.b32.xlu0 %v5056_v4, %s4988_s0 }
  0x1a   :  { %545 = vrot.lane.b32.xlu1 %v5076_v7, %s4987_s22  ;;  %543 = vrot.lane.b32.xlu0 %v5068_v6, %s4987_s22 }
  0x1e   :  { %792 = vrot.lane.b32.xlu1 %v5036_v0, %s4989_s23  ;;  %790 = vrot.lane.b32.xlu0 %v5051_v3, %s4989_s23 }
  0x22   :  { %796 = vrot.lane.b32.xlu1 %v5068_v6, %s4989_s23  ;;  %794 = vrot.lane.b32.xlu0 %v5063_v5, %s4989_s23 }
  0x26   :  { %786 = vrot.lane.b32.xlu1 %v5056_v4, %s4990_s24  ;;  %788 = vrot.lane.b32.xlu0 %v5041_v1, %s4989_s23 }
  0x2a   :  { %1045 = vrot.lane.b32.xlu1 %v5036_v0, %s4991_s25  ;;  %1043 = vrot.lane.b32.xlu0 %v5051_v3, %s4991_s25 }
  0x2e   :  { %1041 = vrot.lane.b32.xlu1 %v5041_v1, %s4991_s25  ;;  %798 = vrot.lane.b32.xlu0 %v5076_v7, %s4989_s23 }
  0x32   :  { %1047 = vrot.lane.b32.xlu1 %v5063_v5, %s4991_s25  ;;  %1039 = vrot.lane.b32.xlu0 %v5056_v4, %s4992_s26 }
  0x36   :  { %1051 = vrot.lane.b32.xlu1 %v5076_v7, %s4991_s25  ;;  %1049 = vrot.lane.b32.xlu0 %v5068_v6, %s4991_s25 }
  0x3a   :  { %1298 = vrot.lane.b32.xlu1 %v5036_v0, %s4993_s27  ;;  %1296 = vrot.lane.b32.xlu0 %v5051_v3, %s4993_s27 }
  0x3e   :  { %1302 = vrot.lane.b32.xlu1 %v5068_v6, %s4993_s27  ;;  %1300 = vrot.lane.b32.xlu0 %v5063_v5, %s4993_s27 }
  0x42   :  { %1292 = vrot.lane.b32.xlu1 %v5056_v4, %s4993_s27  ;;  %1294 = vrot.lane.b32.xlu0 %v5041_v1, %s4993_s27 }
  0x46   :  { %1551 = vrot.lane.b32.xlu1 %v5036_v0, %s4994_s28  ;;  %1549 = vrot.lane.b32.xlu0 %v5051_v3, %s4994_s28 }
  0x4a   :  { %1547 = vrot.lane.b32.xlu1 %v5041_v1, %s4994_s28  ;;  %1304 = vrot.lane.b32.xlu0 %v5076_v7, %s4993_s27 }
  0x4e   :  { %1553 = vrot.lane.b32.xlu1 %v5063_v5, %s4994_s28  ;;  %1545 = vrot.lane.b32.xlu0 %v5056_v4, %s4995_s29 }
  0x52   :  { %1557 = vrot.lane.b32.xlu1 %v5076_v7, %s4994_s28  ;;  %1555 = vrot.lane.b32.xlu0 %v5068_v6, %s4994_s28 }
  0x56   :  { %1804 = vrot.lane.b32.xlu1 %v5036_v0, %s4996_s30  ;;  %1802 = vrot.lane.b32.xlu0 %v5051_v3, %s4996_s30 }
  0x5a   :  { %1808 = vrot.lane.b32.xlu1 %v5068_v6, %s4996_s30  ;;  %1806 = vrot.lane.b32.xlu0 %v5063_v5, %s4996_s30 }
  0x5e   :  { %1798 = vrot.lane.b32.xlu1 %v5056_v4, %s4997_s4  ;;  %1800 = vrot.lane.b32.xlu0 %v5041_v1, %s4996_s30 }
  0x62   :  { %2057 = vrot.lane.b32.xlu1 %v5036_v0, %s4998_s5  ;;  %2055 = vrot.lane.b32.xlu0 %v5051_v3, %s4998_s5 }
  0x66   :  { %2053 = vrot.lane.b32.xlu1 %v5041_v1, %s4998_s5  ;;  %1810 = vrot.lane.b32.xlu0 %v5076_v7, %s4996_s30 }
  0x6a   :  { %2059 = vrot.lane.b32.xlu1 %v5063_v5, %s4998_s5  ;;  %2051 = vrot.lane.b32.xlu0 %v5056_v4, %s4999_s6 }
  0x6e   :  { %2063 = vrot.lane.b32.xlu1 %v5076_v7, %s4998_s5  ;;  %2061 = vrot.lane.b32.xlu0 %v5068_v6, %s4998_s5 }
  0x74   :  { %v64_v8 = vpop.permute.xlu0 %63  ;;  %v60_v9 = vpop.permute.xlu1 %59 }
  0x78   :  { %v52_v10 = vpop.permute.xlu1 %51  ;;  %v62_v11 = vpop.permute.xlu0 %61 }
  0x79   :  { %v73_v12 = vsel %vm71_vm0, %v62_v11, %v64_v8  ;;  %v72_v13 = vsel %vm71_vm0, %v60_v9, %v62_v11 }
  0x7a   :  { %4779 = vmatprep.subr.msk.mxu0 %vm80_vm1, %v73_v12 }
  0x7b   :  { %4780 = vmatpush1.msk.msra.mxu0 %vm80_vm1, %v72_v13 }
  0x7c   :  { %v68_v14 = vpop.permute.xlu1 %67  ;;  %4781 = vmatmul.mubr.msk.f32.vlgmr.msra.gmra.mxu0 %vm77_vm2, %v52_v10  ;;  %v66_v15 = vpop.permute.xlu0 %65 }
  0x7d   :  { %v75_v16 = vsel %vm71_vm0, %v66_v15, %v68_v14  ;;  %v74_v17 = vsel %vm71_vm0, %v64_v8, %v66_v15  ;;  %299 = vmatprep.mubr.f32.mxu0 %v5804_v2 }
  0x7e   :  { %4782 = vmatprep.subr.msk.mxu1 %vm80_vm1, %v75_v16 }
  0x7f   :  { %4783 = vmatpush1.msk.msra.mxu1 %vm80_vm1, %v74_v17 }
  0x80   :  { %v538_v18 = vpop.permute.xlu1 %537  ;;  %4784 = vmatmul.mubr.msk.f32.vlgmr.msra.gmra.mxu1 %vm77_vm2, %v52_v10  ;;  %v70_v19 = vpop.permute.xlu0 %69  ;;  %4788 = vmatprep.subr.msk.mxu1 %vm80_vm1, %v5051_v3 }
  0x81   :  { %v76_v20 = vsel %vm71_vm0, %v68_v14, %v70_v19  ;;  %4785 = vmatprep.subr.msk.mxu0 %vm80_vm1, %v70_v19  ;;  %4789 = vmatpush1.msk.msra.mxu1 %vm80_vm1, %v5041_v1 }
  0x82   :  { %4786 = vmatpush1.msk.msra.mxu0 %vm80_vm1, %v76_v20  ;;  %384 = vmatprep.mubr.f32.mxu1 %v5804_v2 }
  0x83   :  { %4787 = vmatmul.mubr.msk.f32.vlgmr.msra.gmra.mxu0 %vm77_vm2, %v52_v10  ;;  %4791 = vmatprep.subr.msk.mxu0 %vm80_vm1, %v5063_v5 }
  0x84   :  { %v536_v21 = vpop.permute.xlu1 %535  ;;  %4790 = vmatmul.mubr.msk.f32.vlgmr.msra.gmra.mxu1 %vm77_vm2, %v5056_v4  ;;  %v540_v22 = vpop.permute.xlu0 %539  ;;  %4792 = vmatpush1.msk.msra.mxu0 %vm80_vm1, %v5036_v0 }
  0x85   :  { %v548_v23 = vsel %vm547_vm3, %v536_v21, %v538_v18  ;;  %455 = vmatprep.mubr.f32.mxu0 %v5804_v2  ;;  %4794 = vmatprep.subr.msk.mxu1 %vm80_vm1, %v5076_v7  ;;  %v549_v24 = vsel %vm547_vm3, %v538_v18, %v540_v22 }
  0x86   :  { %4797 = vmatprep.subr.msk.mxu0 %vm80_vm1, %v549_v24  ;;  %4795 = vmatpush1.msk.msra.mxu1 %vm80_vm1, %v5068_v6 }
  0x87   :  { %4793 = vmatmul.mubr.msk.f32.vlgmr.msra.gmra.mxu0 %vm77_vm2, %v5056_v4  ;;  %526 = vmatprep.mubr.f32.mxu1 %v5804_v2 }
  0x88   :  { %4798 = vmatpush1.msk.msra.mxu0 %vm80_vm1, %v548_v23  ;;  %v542_v25 = vpop.permute.xlu1 %541  ;;  %4796 = vmatmul.mubr.msk.f32.vlgmr.msra.gmra.mxu1 %vm77_vm2, %v5056_v4  ;;  %v534_v26 = vpop.permute.xlu0 %533 }
  0x89   :  { %631 = vmatprep.mubr.f32.mxu0 %v5804_v2  ;;  %702 = vmatprep.mubr.f32.mxu1 %v5804_v2  ;;  %v550_v31 = vsel %vm547_vm3, %v540_v22, %v542_v25 }
  0x8b   :  { %4799 = vmatmul.mubr.msk.f32.vlgmr.msra.gmra.mxu0 %vm77_vm2, %v534_v26 }
  0x8c   :  { %v546_v27 = vpop.permute.xlu1 %545  ;;  %v544_v28 = vpop.permute.xlu0 %543  ;;  %773 = vmatprep.mubr.f32.mxu0 %v5804_v2 }
  0x8d   :  { %v552_v29 = vsel %vm547_vm3, %v544_v28, %v546_v27  ;;  %4803 = vmatprep.subr.msk.mxu0 %vm80_vm1, %v546_v27  ;;  %v551_v30 = vsel %vm547_vm3, %v542_v25, %v544_v28 }
  0x8e   :  { %4800 = vmatprep.subr.msk.mxu1 %vm80_vm1, %v551_v30  ;;  %4804 = vmatpush1.msk.msra.mxu0 %vm80_vm1, %v552_v29 }
  0x8f   :  { %4801 = vmatpush1.msk.msra.mxu1 %vm80_vm1, %v550_v31  ;;  %4805 = vmatmul.mubr.msk.f32.vlgmr.msra.gmra.mxu0 %vm77_vm2, %v534_v26 }
  0x90   :  { %v793_v32 = vpop.permute.xlu1 %792  ;;  %4802 = vmatmul.mubr.msk.f32.vlgmr.msra.gmra.mxu1 %vm77_vm2, %v534_v26  ;;  %v791_v33 = vpop.permute.xlu0 %790  ;;  %955 = vmatprep.mubr.f32.mxu0 %v5804_v2 }
  0x91   :  { %v802_v34 = vsel %vm800_vm4, %v791_v33, %v793_v32  ;;  %884 = vmatprep.mubr.f32.mxu1 %v5804_v2 }
  0x92   :  { %4806 = vmatprep.subr.msk.mxu1 %vm80_vm1, %v802_v34 }
  0x94   :  { %v797_v35 = vpop.permute.xlu1 %796  ;;  %v795_v36 = vpop.permute.xlu0 %794 }
  0x95   :  { %v803_v37 = vsel %vm800_vm4, %v793_v32, %v795_v36  ;;  %v804_v38 = vsel %vm800_vm4, %v795_v36, %v797_v35 }
  0x96   :  { %4809 = vmatprep.subr.msk.mxu0 %vm80_vm1, %v804_v38 }
  0x97   :  { %4810 = vmatpush1.msk.msra.mxu0 %vm80_vm1, %v803_v37 }
  0x98   :  { %v787_v39 = vpop.permute.xlu1 %786  ;;  %v789_v40 = vpop.permute.xlu0 %788 }
  0x99   :  { %v801_v41 = vsel %vm800_vm4, %v789_v40, %v791_v33  ;;  %4811 = vmatmul.mubr.msk.f32.vlgmr.msra.gmra.mxu0 %vm77_vm2, %v787_v39 }
  0x9a   :  { %4807 = vmatpush1.msk.msra.mxu1 %vm80_vm1, %v801_v41  ;;  %1137 = vmatprep.mubr.f32.mxu0 %v5804_v2 }
  0x9b   :  { %4808 = vmatmul.mubr.msk.f32.vlgmr.msra.gmra.mxu1 %vm77_vm2, %v787_v39 }
  0x9c   :  { %v1046_v42 = vpop.permute.xlu1 %1045  ;;  %v1044_v43 = vpop.permute.xlu0 %1043  ;;  %1026 = vmatprep.mubr.f32.mxu1 %v5804_v2 }
  0x9d   :  { %v1055_v44 = vsel %vm1053_vm5, %v1044_v43, %v1046_v42 }
  0x9e   :  { %4815 = vmatprep.subr.msk.mxu0 %vm80_vm1, %v1055_v44 }
  0xa0   :  { %v1042_v45 = vpop.permute.xlu1 %1041  ;;  %v799_v46 = vpop.permute.xlu0 %798 }
  0xa1   :  { %v1054_v47 = vsel %vm1053_vm5, %v1042_v45, %v1044_v43  ;;  %v805_v48 = vsel %vm800_vm4, %v797_v35, %v799_v46  ;;  %4812 = vmatprep.subr.msk.mxu1 %vm80_vm1, %v799_v46 }
  0xa2   :  { %4813 = vmatpush1.msk.msra.mxu1 %vm80_vm1, %v805_v48  ;;  %4816 = vmatpush1.msk.msra.mxu0 %vm80_vm1, %v1054_v47 }
  0xa3   :  { %4814 = vmatmul.mubr.msk.f32.vlgmr.msra.gmra.mxu1 %vm77_vm2, %v787_v39 }
  0xa4   :  { %v1048_v49 = vpop.permute.xlu1 %1047  ;;  %v1040_v50 = vpop.permute.xlu0 %1039  ;;  %1208 = vmatprep.mubr.f32.mxu1 %v5804_v2 }
  0xa5   :  { %4817 = vmatmul.mubr.msk.f32.vlgmr.msra.gmra.mxu0 %vm77_vm2, %v1040_v50  ;;  %v1056_v55 = vsel %vm1053_vm5, %v1046_v42, %v1048_v49 }
  0xa6   :  { %1279 = vmatprep.mubr.f32.mxu0 %v5804_v2 }
  0xa8   :  { %v1052_v51 = vpop.permute.xlu1 %1051  ;;  %v1050_v52 = vpop.permute.xlu0 %1049 }
  0xa9   :  { %v1057_v53 = vsel %vm1053_vm5, %v1048_v49, %v1050_v52  ;;  %v1058_v54 = vsel %vm1053_vm5, %v1050_v52, %v1052_v51  ;;  %4821 = vmatprep.subr.msk.mxu0 %vm80_vm1, %v1052_v51 }
  0xaa   :  { %4818 = vmatprep.subr.msk.mxu1 %vm80_vm1, %v1057_v53  ;;  %4822 = vmatpush1.msk.msra.mxu0 %vm80_vm1, %v1058_v54 }
  0xab   :  { %4819 = vmatpush1.msk.msra.mxu1 %vm80_vm1, %v1056_v55  ;;  %4823 = vmatmul.mubr.msk.f32.vlgmr.msra.gmra.mxu0 %vm77_vm2, %v1040_v50 }
  0xac   :  { %v1299_v56 = vpop.permute.xlu1 %1298  ;;  %4820 = vmatmul.mubr.msk.f32.vlgmr.msra.gmra.mxu1 %vm77_vm2, %v1040_v50  ;;  %v1297_v57 = vpop.permute.xlu0 %1296  ;;  %1461 = vmatprep.mubr.f32.mxu0 %v5804_v2 }
  0xad   :  { %v1308_v58 = vsel %vm1306_vm6, %v1297_v57, %v1299_v56  ;;  %1390 = vmatprep.mubr.f32.mxu1 %v5804_v2 }
  0xae   :  { %4824 = vmatprep.subr.msk.mxu1 %vm80_vm1, %v1308_v58 }
  0xb0   :  { %v1303_v59 = vpop.permute.xlu1 %1302  ;;  %v1301_v60 = vpop.permute.xlu0 %1300 }
  0xb1   :  { %v1309_v61 = vsel %vm1306_vm6, %v1299_v56, %v1301_v60  ;;  %v1310_v62 = vsel %vm1306_vm6, %v1301_v60, %v1303_v59 }
  0xb2   :  { %4827 = vmatprep.subr.msk.mxu0 %vm80_vm1, %v1310_v62 }
  0xb3   :  { %4828 = vmatpush1.msk.msra.mxu0 %vm80_vm1, %v1309_v61 }
  0xb4   :  { %v1293_v63 = vpop.permute.xlu1 %1292  ;;  %v1295_v0 = vpop.permute.xlu0 %1294 }
  0xb5   :  { %v1307_v1 = vsel %vm1306_vm6, %v1295_v0, %v1297_v57  ;;  %4829 = vmatmul.mubr.msk.f32.vlgmr.msra.gmra.mxu0 %vm77_vm2, %v1293_v63 }
  0xb6   :  { %4825 = vmatpush1.msk.msra.mxu1 %vm80_vm1, %v1307_v1  ;;  %1643 = vmatprep.mubr.f32.mxu0 %v5804_v2 }
  0xb7   :  { %4826 = vmatmul.mubr.msk.f32.vlgmr.msra.gmra.mxu1 %vm77_vm2, %v1293_v63 }
  0xb8   :  { %v1552_v3 = vpop.permute.xlu1 %1551  ;;  %v1550_v5 = vpop.permute.xlu0 %1549  ;;  %1532 = vmatprep.mubr.f32.mxu1 %v5804_v2 }
  0xb9   :  { %v1561_v6 = vsel %vm1559_vm7, %v1550_v5, %v1552_v3 }
  0xba   :  { %4833 = vmatprep.subr.msk.mxu0 %vm80_vm1, %v1561_v6 }
  0xbc   :  { %v1548_v7 = vpop.permute.xlu1 %1547  ;;  %v1305_v8 = vpop.permute.xlu0 %1304 }
  0xbd   :  { %v1560_v9 = vsel %vm1559_vm7, %v1548_v7, %v1550_v5  ;;  %v1311_v10 = vsel %vm1306_vm6, %v1303_v59, %v1305_v8  ;;  %4830 = vmatprep.subr.msk.mxu1 %vm80_vm1, %v1305_v8 }
  0xbe   :  { %4831 = vmatpush1.msk.msra.mxu1 %vm80_vm1, %v1311_v10  ;;  %4834 = vmatpush1.msk.msra.mxu0 %vm80_vm1, %v1560_v9 }
  0xbf   :  { %4832 = vmatmul.mubr.msk.f32.vlgmr.msra.gmra.mxu1 %vm77_vm2, %v1293_v63 }
  0xc0   :  { %v1554_v11 = vpop.permute.xlu1 %1553  ;;  %v1546_v12 = vpop.permute.xlu0 %1545  ;;  %1714 = vmatprep.mubr.f32.mxu1 %v5804_v2 }
  0xc1   :  { %4835 = vmatmul.mubr.msk.f32.vlgmr.msra.gmra.mxu0 %vm77_vm2, %v1546_v12  ;;  %v1562_v17 = vsel %vm1559_vm7, %v1552_v3, %v1554_v11 }
  0xc2   :  { %1785 = vmatprep.mubr.f32.mxu0 %v5804_v2 }
  0xc4   :  { %v1558_v13 = vpop.permute.xlu1 %1557  ;;  %v1556_v14 = vpop.permute.xlu0 %1555 }
  0xc5   :  { %v1563_v15 = vsel %vm1559_vm7, %v1554_v11, %v1556_v14  ;;  %v1564_v16 = vsel %vm1559_vm7, %v1556_v14, %v1558_v13  ;;  %4839 = vmatprep.subr.msk.mxu0 %vm80_vm1, %v1558_v13 }
  0xc6   :  { %4836 = vmatprep.subr.msk.mxu1 %vm80_vm1, %v1563_v15  ;;  %4840 = vmatpush1.msk.msra.mxu0 %vm80_vm1, %v1564_v16 }
  0xc7   :  { %4837 = vmatpush1.msk.msra.mxu1 %vm80_vm1, %v1562_v17  ;;  %4841 = vmatmul.mubr.msk.f32.vlgmr.msra.gmra.mxu0 %vm77_vm2, %v1546_v12 }
  0xc8   :  { %v1805_v18 = vpop.permute.xlu1 %1804  ;;  %4838 = vmatmul.mubr.msk.f32.vlgmr.msra.gmra.mxu1 %vm77_vm2, %v1546_v12  ;;  %v1803_v19 = vpop.permute.xlu0 %1802  ;;  %1967 = vmatprep.mubr.f32.mxu0 %v5804_v2 }
  0xc9   :  { %v1814_v20 = vsel %vm1812_vm8, %v1803_v19, %v1805_v18  ;;  %1896 = vmatprep.mubr.f32.mxu1 %v5804_v2 }
  0xca   :  { %4842 = vmatprep.subr.msk.mxu1 %vm80_vm1, %v1814_v20 }
  0xcc   :  { %v1809_v21 = vpop.permute.xlu1 %1808  ;;  %v1807_v22 = vpop.permute.xlu0 %1806 }
  0xcd   :  { %v1815_v23 = vsel %vm1812_vm8, %v1805_v18, %v1807_v22  ;;  %v1816_v24 = vsel %vm1812_vm8, %v1807_v22, %v1809_v21  ;;  %v20_v18 = vlaneseq }
  0xce   :  { %4845 = vmatprep.subr.msk.mxu0 %vm80_vm1, %v1816_v24 }
  0xcf   :  { %4846 = vmatpush1.msk.msra.mxu0 %vm80_vm1, %v1815_v23  ;;  %v5350_v24 = vshrl.u32 %v20_v18, 7 }
  0xd0   :  { %v1799_v25 = vpop.permute.xlu1 %1798  ;;  %v1801_v26 = vpop.permute.xlu0 %1800 }
  0xd1   :  { %v1813_v27 = vsel %vm1812_vm8, %v1801_v26, %v1803_v19  ;;  %4847 = vmatmul.mubr.msk.f32.vlgmr.msra.gmra.mxu0 %vm77_vm2, %v1799_v25 }
  0xd2   :  { %4843 = vmatpush1.msk.msra.mxu1 %vm80_vm1, %v1813_v27  ;;  %2149 = vmatprep.mubr.f32.mxu0 %v5804_v2 }
  0xd3   :  { %4844 = vmatmul.mubr.msk.f32.vlgmr.msra.gmra.mxu1 %vm77_vm2, %v1799_v25 }
  0xd4   :  { %v2058_v28 = vpop.permute.xlu1 %2057  ;;  %v2056_v29 = vpop.permute.xlu0 %2055  ;;  %2038 = vmatprep.mubr.f32.mxu1 %v5804_v2 }
  0xd5   :  { %v5308_v30 = vsel %vm2065_vm9, %v2056_v29, %v2058_v28 }
  0xd6   :  { %4851 = vmatprep.subr.msk.mxu0 %vm80_vm1, %v5308_v30 }
  0xd8   :  { %v2054_v31 = vpop.permute.xlu1 %2053  ;;  %v1811_v32 = vpop.permute.xlu0 %1810 }
  0xd9   :  { %v5313_v33 = vsel %vm2065_vm9, %v2054_v31, %v2056_v29  ;;  %v1817_v34 = vsel %vm1812_vm8, %v1809_v21, %v1811_v32  ;;  %4848 = vmatprep.subr.msk.mxu1 %vm80_vm1, %v1811_v32 }
  0xda   :  { %4849 = vmatpush1.msk.msra.mxu1 %vm80_vm1, %v1817_v34  ;;  %4852 = vmatpush1.msk.msra.mxu0 %vm80_vm1, %v5313_v33 }
  0xdb   :  { %4850 = vmatmul.mubr.msk.f32.vlgmr.msra.gmra.mxu1 %vm77_vm2, %v1799_v25 }
  0xdc   :  { %v2060_v35 = vpop.permute.xlu1 %2059  ;;  %v2052_v36 = vpop.permute.xlu0 %2051  ;;  %2220 = vmatprep.mubr.f32.mxu1 %v5804_v2 }
  0xdd   :  { %4853 = vmatmul.mubr.msk.f32.vlgmr.msra.gmra.mxu0 %vm77_vm2, %v2052_v36  ;;  %v5336_v41 = vsel %vm2065_vm9, %v2058_v28, %v2060_v35 }
  0xde   :  { %2291 = vmatprep.mubr.f32.mxu0 %v5804_v2 }
  0xe0   :  { %v5324_v37 = vpop.permute.xlu1 %2063  ;;  %v2062_v38 = vpop.permute.xlu0 %2061 }
  0xe1   :  { %5807 = vst [vmem:[#allocation2_spill] sm:$0xff] %v5324_v37  ;;  %v5327_v39 = vsel %vm2065_vm9, %v2060_v35, %v2062_v38  ;;  %v5331_v40 = vsel %vm2065_vm9, %v2062_v38, %v5324_v37  ;;  %4857 = vmatprep.subr.msk.mxu0 %vm80_vm1, %v5324_v37  ;;  %v22_v38 = vsub.s32 0, %v5350_v24 }
  0xe2   :  { %4854 = vmatprep.subr.msk.mxu1 %vm80_vm1, %v5327_v39  ;;  %4858 = vmatpush1.msk.msra.mxu0 %vm80_vm1, %v5331_v40 }
  0xe3   :  { %4855 = vmatpush1.msk.msra.mxu1 %vm80_vm1, %v5336_v41  ;;  %4859 = vmatmul.mubr.msk.f32.vlgmr.msra.gmra.mxu0 %vm77_vm2, %v2052_v36 }
  0xe4   :  { %4856 = vmatmul.mubr.msk.f32.vlgmr.msra.gmra.mxu1 %vm77_vm2, %v2052_v36  ;;  %2579 = vmatprep.mubr.f32.mxu0 %v5804_v2 }
  0xe5   :  { %2508 = vmatprep.mubr.f32.mxu1 %v5804_v2 }
 0x13c   :  { %v159_v42 = vpop.f32.mrf.mxu0 }
 0x13e   :  { %v161_v43 = vpop.f32.mrf.mxu0 }
 0x140   :  { %v230_v45 = vpop.f32.mrf.mxu1 }
 0x142   :  { %v232_v47 = vpop.f32.mrf.mxu1 }
 0x143   :  { %v301_v44 = vpop.f32.mrf.mxu0 }
 0x144   :  { %v386_v49 = vpop.f32.mrf.mxu1 }
 0x145   :  { %v303_v46 = vpop.f32.mrf.mxu0  ;;  %v387_v19 = vadd.f32 %v386_v49, %v159_v42 }
 0x146   :  { %v388_v51 = vpop.f32.mrf.mxu1 }
 0x147   :  { %v457_v48 = vpop.f32.mrf.mxu0  ;;  %v389_v22 = vadd.f32 %v388_v51, %v161_v43  ;;  %v17_v43 = vld [vmem:[%s5802_s1] sm:$0x3f]  ;;  %s5003_s1 = smov 88  }
 0x148   :  { %v528_v53 = vpop.f32.mrf.mxu1  ;;  %v458_v34 = vadd.f32 %v457_v48, %v230_v45 }
 0x149   :  { %v459_v50 = vpop.f32.mrf.mxu0  ;;  %v529_v29 = vadd.f32 %v528_v53, %v301_v44 }
 0x14a   :  { %v530_v55 = vpop.f32.mrf.mxu1  ;;  %v460_v51 = vadd.f32 %v459_v50, %v232_v47 }
 0x14b   :  { %v633_v52 = vpop.f32.mrf.mxu0  ;;  %v531_v2 = vadd.f32 %v530_v55, %v303_v46  ;;  %v5357_v46 = vrot.slane %v17_v43, %v22_v38 }
 0x14c   :  { %v780_v23 = vadd.f32 %v633_v52, %v387_v19 }
 0x14d   :  { %v635_v54 = vpop.f32.mrf.mxu0 }
 0x14e   :  { %v781_v25 = vadd.f32 %v635_v54, %v389_v22  ;;  %v26_v54 = vsub.s32 1, %v5350_v24 }
 0x14f   :  { %v775_v56 = vpop.f32.mrf.mxu0 }
 0x150   :  { %v704_v57 = vpop.f32.mrf.mxu1  ;;  %v784_v42 = vadd.f32 %v775_v56, %v529_v29 }
 0x151   :  { %v777_v58 = vpop.f32.mrf.mxu0  ;;  %v782_v52 = vadd.f32 %v704_v57, %v458_v34  ;;  %v5359_v57 = vrot.slane %v17_v43, %v26_v54 }
 0x152   :  { %v706_v59 = vpop.f32.mrf.mxu1  ;;  %v785_v44 = vadd.f32 %v777_v58, %v531_v2  ;;  %v38_v2 = vsub.s32 4, %v5350_v24 }
 0x153   :  { %v783_v48 = vadd.f32 %v706_v59, %v460_v51 }
 0x159   :  { %v957_v60 = vpop.f32.mrf.mxu0 }
 0x15b   :  { %v886_v61 = vpop.f32.mrf.mxu1  ;;  %v959_v62 = vpop.f32.mrf.mxu0 }
 0x15c   :  { %v1033_v26 = vadd.f32 %v886_v61, %v780_v23  ;;  %v1036_v19 = vadd.f32 %v959_v62, %v783_v48 }
 0x15d   :  { %v888_v63 = vpop.f32.mrf.mxu1 }
 0x15e   :  { %v1034_v31 = vadd.f32 %v888_v63, %v781_v25  ;;  %v1035_v63 = vadd.f32 %v957_v60, %v782_v52 }
 0x163   :  { %v1028_v0 = vpop.f32.mrf.mxu1 }
 0x164   :  { %v1037_v53 = vadd.f32 %v1028_v0, %v784_v42 }
 0x165   :  { %v1139_v1 = vpop.f32.mrf.mxu0  ;;  %v1030_v3 = vpop.f32.mrf.mxu1 }
 0x166   :  { %v1286_v32 = vadd.f32 %v1139_v1, %v1033_v26  ;;  %v1038_v55 = vadd.f32 %v1030_v3, %v785_v44  ;;  %v30_v3 = vsub.s32 2, %v5350_v24  ;;  %v34_v26 = vsub.s32 3, %v5350_v24 }
 0x167   :  { %v1141_v5 = vpop.f32.mrf.mxu0 }
 0x168   :  { %v1287_v49 = vadd.f32 %v1141_v5, %v1034_v31  ;;  %v5374_v31 = vrot.slane %v17_v43, %v38_v2  ;;  %v5376_v34 = vrot.slane %v17_v43, %v30_v3 }
 0x16b   :  { %v1281_v6 = vpop.f32.mrf.mxu0 }
 0x16c   :  { %v1210_v7 = vpop.f32.mrf.mxu1  ;;  %v1290_v56 = vadd.f32 %v1281_v6, %v1037_v53  ;;  %v42_v6 = vsub.s32 5, %v5350_v24 }
 0x16d   :  { %v1283_v8 = vpop.f32.mrf.mxu0  ;;  %v1288_v22 = vadd.f32 %v1210_v7, %v1035_v63 }
 0x16e   :  { %v1212_v9 = vpop.f32.mrf.mxu1  ;;  %v1291_v58 = vadd.f32 %v1283_v8, %v1038_v55 }
 0x16f   :  { %v1289_v0 = vadd.f32 %v1212_v9, %v1036_v19 }
 0x175   :  { %v1463_v10 = vpop.f32.mrf.mxu0 }
 0x177   :  { %v1392_v11 = vpop.f32.mrf.mxu1  ;;  %v5348_v12 = vpop.f32.mrf.mxu0 }
 0x178   :  { %v1539_v37 = vadd.f32 %v1392_v11, %v1286_v32  ;;  %v1542_v8 = vadd.f32 %v5348_v12, %v1289_v0 }
 0x179   :  { %v1394_v13 = vpop.f32.mrf.mxu1 }
 0x17a   :  { %v1540_v61 = vadd.f32 %v1394_v13, %v1287_v49  ;;  %v1541_v13 = vadd.f32 %v1463_v10, %v1288_v22 }
 0x17f   :  { %v1534_v14 = vpop.f32.mrf.mxu1 }
 0x181   :  { %v1645_v15 = vpop.f32.mrf.mxu0  ;;  %v1536_v16 = vpop.f32.mrf.mxu1 }
 0x182   :  { %v1792_v45 = vadd.f32 %v1645_v15, %v1539_v37  ;;  %v1543_v37 = vadd.f32 %v1534_v14, %v1290_v56  ;;  %v1544_v62 = vadd.f32 %v1536_v16, %v1291_v58 }
 0x183   :  { %v1647_v17 = vpop.f32.mrf.mxu0 }
 0x184   :  { %v1793_v5 = vadd.f32 %v1647_v17, %v1540_v61 }
 0x187   :  { %v1787_v20 = vpop.f32.mrf.mxu0 }
 0x188   :  { %v1716_v21 = vpop.f32.mrf.mxu1  ;;  %v1796_v7 = vadd.f32 %v1787_v20, %v1543_v37 }
 0x189   :  { %v1789_v27 = vpop.f32.mrf.mxu0  ;;  %v1794_v14 = vadd.f32 %v1716_v21, %v1541_v13 }
 0x18a   :  { %v1718_v28 = vpop.f32.mrf.mxu1  ;;  %v1797_v9 = vadd.f32 %v1789_v27, %v1544_v62 }
 0x18b   :  { %v1795_v16 = vadd.f32 %v1718_v28, %v1542_v8 }
 0x191   :  { %v1969_v35 = vpop.f32.mrf.mxu0 }
 0x192   :  { %v2047_v20 = vadd.f32 %v1969_v35, %v1794_v14  ;;  %v5387_v35 = vrot.slane %v17_v43, %v34_v26  ;;  %v5000_v14 = vmov 73   ;;  %v5002_v26 = vmov 76  }
 0x193   :  { %v1898_v36 = vpop.f32.mrf.mxu1  ;;  %v1971_v1 = vpop.f32.mrf.mxu0  ;;  %4971 = vset.pattern.permute.xlu1 %v5000_v14 }
 0x194   :  { %v2045_v11 = vadd.f32 %v1898_v36, %v1792_v45  ;;  %v5378_v36 = vrot.slane %v17_v43, %v42_v6  ;;  %v2048_v42 = vadd.f32 %v1971_v1, %v1795_v16 }
 0x195   :  { %v1900_v18 = vpop.f32.mrf.mxu1 }
 0x196   :  { %v2046_v59 = vadd.f32 %v1900_v18, %v1793_v5 }
 0x19b   :  { %v2040_v47 = vpop.f32.mrf.mxu1 }
 0x19c   :  { %v2049_v10 = vadd.f32 %v2040_v47, %v1796_v7 }
 0x19d   :  { %v2151_v50 = vpop.f32.mrf.mxu0  ;;  %v2042_v25 = vpop.f32.mrf.mxu1 }
 0x19e   :  { %v5362_v60 = vadd.f32 %v2151_v50, %v2045_v11  ;;  %v2050_v38 = vadd.f32 %v2042_v25, %v1797_v9  ;;  %v5001_v25 = vmov 72  }
 0x19f   :  { %v2153_v15 = vpop.f32.mrf.mxu0  ;;  %4970 = vset.pattern.permute.xlu0 %v5001_v25 }
 0x1a0   :  { %v2304_v17 = vmul.f32 %v5362_v60, %v5357_v46  ;;  %v5368_v23 = vadd.f32 %v2153_v15, %v2046_v59 }
 0x1a2   :  { %v2305_v29 = vmul.f32 %v5368_v23, %v5359_v57  ;;  %v2324_v12 = vmul.f32 %v2304_v17, %v5362_v60  ;;  %v2310_v52 = vsel %vm80_vm1, %v2304_v17, 0.0 }
 0x1a3   :  { %v2293_v32 = vpop.f32.mrf.mxu0 }
 0x1a4   :  { %v2325_v21 = vmul.f32 %v2305_v29, %v5368_v23  ;;  %v5382_v24 = vadd.f32 %v2293_v32, %v2049_v10  ;;  %v2222_v27 = vpop.f32.mrf.mxu1  ;;  %v2311_v49 = vsel %vm80_vm1, %v2305_v29, 0.0  ;;  %v2330_v63 = vsel %vm80_vm1, %v2324_v12, 0.0 }
 0x1a5   :  { %v5385_v51 = vadd.f32 %v2222_v27, %v2047_v20  ;;  %v2295_v28 = vpop.f32.mrf.mxu0  ;;  %v2312_v1 = vadd.f32 %v2311_v49, %v2310_v52 }
 0x1a6   :  { %v5390_v54 = vadd.f32 %v2295_v28, %v2050_v38  ;;  %v2224_v44 = vpop.f32.mrf.mxu1  ;;  %v2331_v53 = vsel %vm80_vm1, %v2325_v21, 0.0  ;;  %v2308_v61 = vmul.f32 %v5382_v24, %v5374_v31 }
 0x1a7   :  { %v2306_v45 = vmul.f32 %v5385_v51, %v5376_v34  ;;  %v5397_v48 = vadd.f32 %v2224_v44, %v2048_v42  ;;  %v2332_v5 = vadd.f32 %v2331_v53, %v2330_v63 }
 0x1a8   :  { %v2309_v56 = vmul.f32 %v5390_v54, %v5378_v36  ;;  %v2328_v19 = vmul.f32 %v2308_v61, %v5382_v24  ;;  %v2317_v37 = vsel %vm80_vm1, %v2308_v61, 0.0 }
 0x1a9   :  { %v2313_v43 = vsel %vm80_vm1, %v2306_v45, 0.0  ;;  %v2326_v18 = vmul.f32 %v2306_v45, %v5385_v51  ;;  %v2307_v55 = vmul.f32 %v5397_v48, %v5387_v35 }
 0x1aa   :  { %v2314_v11 = vadd.f32 %v2313_v43, %v2312_v1  ;;  %v2329_v59 = vmul.f32 %v2309_v56, %v5390_v54  ;;  %v2320_v3 = vsel %vm2319_vm10, %v2309_v56, 0.0  ;;  %v2337_v6 = vsel %vm80_vm1, %v2328_v19, 0.0 }
 0x1ab   :  { %v2333_v22 = vsel %vm80_vm1, %v2326_v18, 0.0  ;;  %v2327_v47 = vmul.f32 %v2307_v55, %v5397_v48  ;;  %v2315_v50 = vsel %vm80_vm1, %v2307_v55, 0.0 }
 0x1ac   :  { %v2316_v2 = vadd.f32 %v2315_v50, %v2314_v11  ;;  %v2334_v58 = vadd.f32 %v2333_v22, %v2332_v5  ;;  %v2339_v17 = vsel %vm2319_vm10, %v2329_v59, 0.0 }
 0x1ad   :  { %v2335_v0 = vsel %vm80_vm1, %v2327_v47, 0.0 }
 0x1ae   :  { %v2318_v13 = vadd.f32 %v2317_v37, %v2316_v2  ;;  %v2336_v15 = vadd.f32 %v2335_v0, %v2334_v58 }
 0x1b0   :  { %v2321_v62 = vadd.f32 %v2320_v3, %v2318_v13  ;;  %v2338_v7 = vadd.f32 %v2337_v6, %v2336_v15 }
 0x1b2   :  { %2322 = vadd.xlane.f32.xlu0 %v2321_v62  ;;  %v2340_v8 = vadd.f32 %v2339_v17, %v2338_v7 }
 0x1b4   :  { %2341 = vadd.xlane.f32.xlu1 %v2340_v8 }
 0x1c5   :  { %2368 = vperm.xlu1 %4971, %v5056_v4  }
 0x1c9   :  { %4972 = vset.pattern.permute.xlu1 %v5002_v26 }
 0x1ca   :  { %2384 = vperm.xlu1 %4972, %v5056_v4  }
 0x1ce   :  { %2405 = vrot.lane.b32.xlu1 %v5056_v4, %s5003_s1 }
 0x1d2   :  { %3138 = vrot.lane.b32.xlu1 %v5056_v4, %s5004_s9 }
 0x1d6   :  { %3642 = vrot.lane.b32.xlu1 %v5056_v4, %s5005_s10 }
 0x1da   :  { %4146 = vrot.lane.b32.xlu1 %v5056_v4, %s5006_s11 }
 0x23b   :  { %v2323_v9 = vpop.xlane.xlu0 %2322 }
 0x23c   :  { %v2343_v10 = vmul.f32 0.001953125, %v2323_v9 }
 0x23d   :  { %v2342_v29 = vpop.xlane.xlu1 %2341 }
 0x23e   :  { %v2344_v16 = vmul.f32 0.001953125, %v2342_v29  ;;  %v2345_v20 = vmul.f32 %v2343_v10, %v2343_v10  ;;  %v2350_v42 = vsub.f32 %v5368_v23, %v2343_v10  ;;  %v2351_v49 = vsub.f32 %v5385_v51, %v2343_v10 }
 0x23f   :  { %v2353_v28 = vsub.f32 %v5382_v24, %v2343_v10  ;;  %v2349_v44 = vsub.f32 %v5362_v60, %v2343_v10  ;;  %v2354_v11 = vsub.f32 %v5390_v54, %v2343_v10 }
 0x240   :  { %v2346_v32 = vsub.f32 %v2344_v16, %v2345_v20 }
 0x241   :  { %v2369_v27 = vpop.permute.xlu1 %2368 }
 0x242   :  { %v2347_v38 = vadd.f32 1e-05, %v2346_v32 }
 0x244   :  { %4979 = vrsqrt.f32 %v2347_v38 }
 0x245   :  { %v2385_v18 = vpop.permute.xlu1 %2384 }
 0x249   :  { %v2406_v8 = vpop.permute.xlu1 %2405 }
 0x24d   :  { %v5551_v25 = vpop.permute.xlu1 %3138 }
 0x251   :  { %v4980_v12 = vpop.eup %4979 }
 0x252   :  { %v2355_v21 = vmul.f32 %v4980_v12, %v5056_v4 }
 0x254   :  { %2358 = vperm.xlu0 %4970, %v2355_v21   ;;  %v5808_v21 = vmov 0.0  }
 0x258   :  { %2657 = vrot.lane.b32.xlu0 %v5056_v4, %s4994_s28 }
 0x25c   :  { %2886 = vrot.lane.b32.xlu0 %v5056_v4, %s5007_s12 }
 0x260   :  { %3390 = vrot.lane.b32.xlu0 %v5056_v4, %s5008_s13 }
 0x264   :  { %3894 = vrot.lane.b32.xlu0 %v5056_v4, %s5009_s14 }
 0x268   :  { %4398 = vrot.lane.b32.xlu0 %v5056_v4, %s5010_s15  ;;  %v2352_v4 = vsub.f32 %v5397_v48, %v2343_v10 }
 0x2cf   :  { %v2359_v52 = vpop.permute.xlu0 %2358 }
 0x2d0   :  { %v2362_v53 = vmul.f32 %v2359_v52, %v2350_v42  ;;  %v2363_v61 = vmul.f32 %v2359_v52, %v2351_v49  ;;  %v2365_v45 = vmul.f32 %v2359_v52, %v2353_v28  ;;  %v2361_v63 = vmul.f32 %v2359_v52, %v2349_v44 }
 0x2d1   :  { %v2364_v56 = vmul.f32 %v2359_v52, %v2352_v4  ;;  %v2366_v22 = vmul.f32 %v2359_v52, %v2354_v11 }
 0x2d2   :  { %v2372_v1 = vadd.f32 %v2369_v27, %v2362_v53  ;;  %v2373_v43 = vadd.f32 %v2369_v27, %v2363_v61  ;;  %v2375_v55 = vadd.f32 %v2369_v27, %v2365_v45  ;;  %v2371_v51 = vadd.f32 %v2369_v27, %v2361_v63 }
 0x2d3   :  { %v2374_v50 = vadd.f32 %v2369_v27, %v2364_v56  ;;  %v2376_v37 = vadd.f32 %v2369_v27, %v2366_v22  ;;  %v2658_v17 = vpop.permute.xlu0 %2657 }
 0x2d4   :  { %vm2378_vm11 = vcmp.gt.f32.partialorder %v2372_v1, 0.0  ;;  %vm2381_vm12 = vcmp.gt.f32.partialorder %v2375_v55, 0.0  ;;  %v2388_v23 = vmul.f32 %v2385_v18, %v2372_v1  ;;  %v2389_v5 = vmul.f32 %v2385_v18, %v2373_v43 }
 0x2d5   :  { %v2391_v24 = vmul.f32 %v2385_v18, %v2375_v55  ;;  %vm2379_vm13 = vcmp.gt.f32.partialorder %v2373_v43, 0.0  ;;  %v2387_v2 = vmul.f32 %v2385_v18, %v2371_v51  ;;  %vm2377_vm14 = vcmp.gt.f32.partialorder %v2371_v51, 0.0 }
 0x2d6   :  { %v2394_v60 = vsel %vm2378_vm11, %v2372_v1, %v2388_v23  ;;  %v2395_v58 = vsel %vm2379_vm13, %v2373_v43, %v2389_v5  ;;  %v2390_v59 = vmul.f32 %v2385_v18, %v2374_v50  ;;  %vm2380_vm15 = vcmp.gt.f32.partialorder %v2374_v50, 0.0 }
 0x2d7   :  { %v2397_v19 = vsel %vm2381_vm12, %v2375_v55, %v2391_v24  ;;  %v5434_v47 = vmul.f32 %v2394_v60, %v5359_v57  ;;  %v5444_v54 = vmul.f32 %v2395_v58, %v5376_v34  ;;  %v2393_v0 = vsel %vm2377_vm14, %v2371_v51, %v2387_v2  ;;  %v5543_v14 = vpop.permute.xlu0 %2886 }
 0x2d8   :  { %v5437_v48 = vmul.f32 %v2397_v19, %v5374_v31  ;;  %v5451_v13 = vmul.f32 %v2393_v0, %v5357_v46  ;;  %v2392_v15 = vmul.f32 %v2385_v18, %v2376_v37  ;;  %v2396_v3 = vsel %vm2380_vm15, %v2374_v50, %v2390_v59 }
 0x2d9   :  { %2415 = vrot.lane.b32.xlu1 %v5434_v47, %s4985_s16  ;;  %vm2382_vm10 = vcmp.gt.f32.partialorder %v2376_v37, 0.0  ;;  %v5458_v6 = vmul.f32 %v2396_v3, %v5387_v35 }
 0x2da   :  { %2421 = vrot.lane.b32.xlu0 %v5437_v48, %s4985_s16  ;;  %v2398_v62 = vsel %vm2382_vm10, %v2376_v37, %v2392_v15 }
 0x2db   :  { %v5465_v7 = vmul.f32 %v2398_v62, %v5378_v36 }
 0x2dd   :  { %2417 = vrot.lane.b32.xlu1 %v5444_v54, %s4985_s16 }
 0x2de   :  { %2892 = vrot.lane.b32.xlu0 %v5444_v54, %s4987_s22 }
 0x2e1   :  { %2413 = vrot.lane.b32.xlu1 %v5451_v13, %s4985_s16 }
 0x2e2   :  { %2896 = vrot.lane.b32.xlu0 %v5437_v48, %s4987_s22 }
 0x2e5   :  { %2419 = vrot.lane.b32.xlu1 %v5458_v6, %s4985_s16 }
 0x2e6   :  { %3142 = vrot.lane.b32.xlu0 %v5434_v47, %s4989_s23 }
 0x2e9   :  { %2423 = vrot.lane.b32.xlu1 %v5465_v7, %s4985_s16 }
 0x2ea   :  { %3146 = vrot.lane.b32.xlu0 %v5458_v6, %s4989_s23 }
 0x2ed   :  { %2890 = vrot.lane.b32.xlu1 %v5434_v47, %s4987_s22 }
 0x2ee   :  { %3140 = vrot.lane.b32.xlu0 %v5451_v13, %s4989_s23 }
 0x2f1   :  { %2888 = vrot.lane.b32.xlu1 %v5451_v13, %s4987_s22 }
 0x2f2   :  { %3394 = vrot.lane.b32.xlu0 %v5434_v47, %s4991_s25 }
 0x2f5   :  { %2894 = vrot.lane.b32.xlu1 %v5458_v6, %s4987_s22 }
 0x2f6   :  { %3150 = vrot.lane.b32.xlu0 %v5465_v7, %s4989_s23 }
 0x2f9   :  { %2898 = vrot.lane.b32.xlu1 %v5465_v7, %s4987_s22 }
 0x2fa   :  { %3400 = vrot.lane.b32.xlu0 %v5437_v48, %s4991_s25 }
 0x2fd   :  { %3144 = vrot.lane.b32.xlu1 %v5444_v54, %s4989_s23 }
 0x2fe   :  { %3646 = vrot.lane.b32.xlu0 %v5434_v47, %s4993_s27 }
 0x301   :  { %3148 = vrot.lane.b32.xlu1 %v5437_v48, %s4989_s23 }
 0x302   :  { %3650 = vrot.lane.b32.xlu0 %v5458_v6, %s4993_s27 }
 0x305   :  { %3396 = vrot.lane.b32.xlu1 %v5444_v54, %s4991_s25 }
 0x306   :  { %3644 = vrot.lane.b32.xlu0 %v5451_v13, %s4993_s27 }
 0x309   :  { %3392 = vrot.lane.b32.xlu1 %v5451_v13, %s4991_s25 }
 0x30a   :  { %3898 = vrot.lane.b32.xlu0 %v5434_v47, %s4994_s28 }
 0x30d   :  { %3398 = vrot.lane.b32.xlu1 %v5458_v6, %s4991_s25 }
 0x30e   :  { %3654 = vrot.lane.b32.xlu0 %v5465_v7, %s4993_s27 }
 0x311   :  { %3402 = vrot.lane.b32.xlu1 %v5465_v7, %s4991_s25 }
 0x312   :  { %3904 = vrot.lane.b32.xlu0 %v5437_v48, %s4994_s28 }
 0x315   :  { %3648 = vrot.lane.b32.xlu1 %v5444_v54, %s4993_s27 }
 0x316   :  { %4150 = vrot.lane.b32.xlu0 %v5434_v47, %s4996_s30 }
 0x319   :  { %3652 = vrot.lane.b32.xlu1 %v5437_v48, %s4993_s27 }
 0x31a   :  { %4154 = vrot.lane.b32.xlu0 %v5458_v6, %s4996_s30 }
 0x31d   :  { %3900 = vrot.lane.b32.xlu1 %v5444_v54, %s4994_s28 }
 0x31e   :  { %4148 = vrot.lane.b32.xlu0 %v5451_v13, %s4996_s30 }
 0x321   :  { %3896 = vrot.lane.b32.xlu1 %v5451_v13, %s4994_s28 }
 0x322   :  { %4402 = vrot.lane.b32.xlu0 %v5434_v47, %s4998_s5 }
 0x325   :  { %3902 = vrot.lane.b32.xlu1 %v5458_v6, %s4994_s28 }
 0x326   :  { %4158 = vrot.lane.b32.xlu0 %v5465_v7, %s4996_s30 }
 0x329   :  { %3906 = vrot.lane.b32.xlu1 %v5465_v7, %s4994_s28 }
 0x32a   :  { %4408 = vrot.lane.b32.xlu0 %v5437_v48, %s4998_s5 }
 0x32d   :  { %4152 = vrot.lane.b32.xlu1 %v5444_v54, %s4996_s30 }
 0x32e   :  { %4650 = vrot.lane.b32.xlu0 %v5357_v46, %s4991_s25  ;;  %v5553_v46 = vpop.permute.xlu0 %3390 }
 0x331   :  { %4156 = vrot.lane.b32.xlu1 %v5437_v48, %s4996_s30 }
 0x332   :  { %4654 = vrot.lane.b32.xlu0 %v5376_v34, %s4991_s25  ;;  %v5557_v34 = vpop.permute.xlu1 %3642  ;;  %v5559_v26 = vpop.permute.xlu0 %3894 }
 0x335   :  { %4404 = vrot.lane.b32.xlu1 %v5444_v54, %s4998_s5 }
 0x336   :  { %4658 = vrot.lane.b32.xlu0 %v5374_v31, %s4991_s25  ;;  %v5563_v9 = vpop.permute.xlu1 %4146  ;;  %v5567_v31 = vpop.permute.xlu0 %4398 }
 0x339   :  { %4400 = vrot.lane.b32.xlu1 %v5451_v13, %s4998_s5 }
 0x33d   :  { %4406 = vrot.lane.b32.xlu1 %v5458_v6, %s4998_s5 }
 0x341   :  { %4410 = vrot.lane.b32.xlu1 %v5465_v7, %s4998_s5 }
 0x345   :  { %4652 = vrot.lane.b32.xlu1 %v5359_v57, %s4991_s25 }
 0x349   :  { %4656 = vrot.lane.b32.xlu1 %v5387_v35, %s4991_s25 }
 0x34b   :  { %v2416_v10 = vpop.permute.xlu1 %2415 }
 0x34c   :  { %v2422_v29 = vpop.permute.xlu0 %2421 }
 0x34d   :  { %4660 = vrot.lane.b32.xlu1 %v5378_v36, %s4991_s25 }
 0x34f   :  { %v2418_v16 = vpop.permute.xlu1 %2417 }
 0x350   :  { %v2426_v20 = vsel %vm71_vm0, %v2416_v10, %v2418_v16  ;;  %v2893_v32 = vpop.permute.xlu0 %2892 }
 0x351   :  { %4860 = vmatprep.subr.msk.mxu1 %vm80_vm1, %v2426_v20 }
 0x353   :  { %v2414_v38 = vpop.permute.xlu1 %2413 }
 0x354   :  { %v2425_v12 = vsel %vm71_vm0, %v2414_v38, %v2416_v10  ;;  %v2897_v57 = vpop.permute.xlu0 %2896 }
 0x355   :  { %4861 = vmatpush1.msk.msra.mxu1 %vm80_vm1, %v2425_v12 }
 0x356   :  { %4862 = vmatmul.mubr.msk.f32.vlgmr.msra.gmra.mxu1 %vm77_vm2, %v2406_v8 }
 0x357   :  { %v2420_v35 = vpop.permute.xlu1 %2419  ;;  %2650 = vmatprep.mubr.f32.mxu1 %v5808_v21 }
 0x358   :  { %v2427_v27 = vsel %vm71_vm0, %v2418_v16, %v2420_v35  ;;  %v2428_v36 = vsel %vm71_vm0, %v2420_v35, %v2422_v29  ;;  %v3143_v42 = vpop.permute.xlu0 %3142 }
 0x359   :  { %4863 = vmatprep.subr.msk.mxu0 %vm80_vm1, %v2428_v36 }
 0x35a   :  { %4864 = vmatpush1.msk.msra.mxu0 %vm80_vm1, %v2427_v27 }
 0x35b   :  { %v2424_v49 = vpop.permute.xlu1 %2423  ;;  %4865 = vmatmul.mubr.msk.f32.vlgmr.msra.gmra.mxu0 %vm77_vm2, %v2406_v8  ;;  %4869 = vmatprep.subr.msk.mxu0 %vm80_vm1, %v5434_v47 }
 0x35c   :  { %v2429_v28 = vsel %vm71_vm0, %v2422_v29, %v2424_v49  ;;  %v3147_v52 = vpop.permute.xlu0 %3146  ;;  %4866 = vmatprep.subr.msk.mxu1 %vm80_vm1, %v2424_v49  ;;  %4870 = vmatpush1.msk.msra.mxu0 %vm80_vm1, %v5451_v13  ;;  %vm4688_vm0 = vcmask 60416  }
 0x35d   :  { %4867 = vmatpush1.msk.msra.mxu1 %vm80_vm1, %v2429_v28  ;;  %4875 = vmatprep.subr.msk.mxu0 %vm80_vm1, %v5465_v7 }
 0x35e   :  { %4868 = vmatmul.mubr.msk.f32.vlgmr.msra.gmra.mxu1 %vm77_vm2, %v2406_v8  ;;  %2737 = vmatprep.mubr.f32.mxu0 %v5808_v21 }
 0x35f   :  { %4872 = vmatprep.subr.msk.mxu1 %vm80_vm1, %v5458_v6  ;;  %v2891_v44 = vpop.permute.xlu1 %2890  ;;  %4871 = vmatmul.mubr.msk.f32.vlgmr.msra.gmra.mxu0 %vm77_vm2, %v2658_v17 }
 0x360   :  { %v2901_v53 = vsel %vm547_vm3, %v2891_v44, %v2893_v32  ;;  %4873 = vmatpush1.msk.msra.mxu1 %vm80_vm1, %v5444_v54  ;;  %4876 = vmatpush1.msk.msra.mxu0 %vm80_vm1, %v5437_v48  ;;  %v3141_v61 = vpop.permute.xlu0 %3140 }
 0x361   :  { %2808 = vmatprep.mubr.f32.mxu1 %v5808_v21  ;;  %4878 = vmatprep.subr.msk.mxu1 %vm80_vm1, %v2901_v53  ;;  %v3152_v60 = vsel %vm800_vm4, %v3141_v61, %v3143_v42 }
 0x362   :  { %4874 = vmatmul.mubr.msk.f32.vlgmr.msra.gmra.mxu1 %vm77_vm2, %v2658_v17  ;;  %2879 = vmatprep.mubr.f32.mxu0 %v5808_v21 }
 0x363   :  { %v2889_v45 = vpop.permute.xlu1 %2888  ;;  %4877 = vmatmul.mubr.msk.f32.vlgmr.msra.gmra.mxu0 %vm77_vm2, %v2658_v17  ;;  %2983 = vmatprep.mubr.f32.mxu1 %v5808_v21 }
 0x364   :  { %v2900_v63 = vsel %vm547_vm3, %v2889_v45, %v2891_v44  ;;  %v3395_v1 = vpop.permute.xlu0 %3394  ;;  %3054 = vmatprep.mubr.f32.mxu0 %v5808_v21 }
 0x365   :  { %4879 = vmatpush1.msk.msra.mxu1 %vm80_vm1, %v2900_v63 }
 0x366   :  { %4880 = vmatmul.mubr.msk.f32.vlgmr.msra.gmra.mxu1 %vm77_vm2, %v5543_v14 }
 0x367   :  { %v2895_v43 = vpop.permute.xlu1 %2894  ;;  %3125 = vmatprep.mubr.f32.mxu1 %v5808_v21 }
 0x368   :  { %v2902_v18 = vsel %vm547_vm3, %v2893_v32, %v2895_v43  ;;  %v2903_v55 = vsel %vm547_vm3, %v2895_v43, %v2897_v57  ;;  %v3151_v4 = vpop.permute.xlu0 %3150 }
 0x369   :  { %4881 = vmatprep.subr.msk.mxu0 %vm80_vm1, %v2903_v55 }
 0x36a   :  { %4882 = vmatpush1.msk.msra.mxu0 %vm80_vm1, %v2902_v18 }
 0x36b   :  { %v2899_v23 = vpop.permute.xlu1 %2898  ;;  %4883 = vmatmul.mubr.msk.f32.vlgmr.msra.gmra.mxu0 %vm77_vm2, %v5543_v14 }
 0x36c   :  { %v2904_v56 = vsel %vm547_vm3, %v2897_v57, %v2899_v23  ;;  %v3401_v51 = vpop.permute.xlu0 %3400  ;;  %4884 = vmatprep.subr.msk.mxu1 %vm80_vm1, %v2899_v23  ;;  %3235 = vmatprep.mubr.f32.mxu0 %v5808_v21 }
 0x36d   :  { %4885 = vmatpush1.msk.msra.mxu1 %vm80_vm1, %v2904_v56 }
 0x36e   :  { %4886 = vmatmul.mubr.msk.f32.vlgmr.msra.gmra.mxu1 %vm77_vm2, %v5543_v14 }
 0x36f   :  { %v3145_v5 = vpop.permute.xlu1 %3144  ;;  %3306 = vmatprep.mubr.f32.mxu1 %v5808_v21 }
 0x370   :  { %v3153_v24 = vsel %vm800_vm4, %v3143_v42, %v3145_v5  ;;  %v3647_v11 = vpop.permute.xlu0 %3646  ;;  %v3154_v2 = vsel %vm800_vm4, %v3145_v5, %v3147_v52 }
 0x371   :  { %4887 = vmatprep.subr.msk.mxu0 %vm80_vm1, %v3153_v24 }
 0x372   :  { %4888 = vmatpush1.msk.msra.mxu0 %vm80_vm1, %v3152_v60 }
 0x373   :  { %v3149_v19 = vpop.permute.xlu1 %3148  ;;  %4889 = vmatmul.mubr.msk.f32.vlgmr.msra.gmra.mxu0 %vm77_vm2, %v5551_v25  ;;  %4893 = vmatprep.subr.msk.mxu0 %vm80_vm1, %v3151_v4 }
 0x374   :  { %v3155_v22 = vsel %vm800_vm4, %v3147_v52, %v3149_v19  ;;  %v3156_v47 = vsel %vm800_vm4, %v3149_v19, %v3151_v4  ;;  %v3651_v50 = vpop.permute.xlu0 %3650  ;;  %3377 = vmatprep.mubr.f32.mxu0 %v5808_v21 }
 0x375   :  { %4890 = vmatprep.subr.msk.mxu1 %vm80_vm1, %v3155_v22  ;;  %4894 = vmatpush1.msk.msra.mxu0 %vm80_vm1, %v3156_v47 }
 0x376   :  { %4891 = vmatpush1.msk.msra.mxu1 %vm80_vm1, %v3154_v2 }
 0x377   :  { %v3397_v58 = vpop.permute.xlu1 %3396  ;;  %4892 = vmatmul.mubr.msk.f32.vlgmr.msra.gmra.mxu1 %vm77_vm2, %v5551_v25  ;;  %4895 = vmatmul.mubr.msk.f32.vlgmr.msra.gmra.mxu0 %vm77_vm2, %v5551_v25 }
 0x378   :  { %v3405_v48 = vsel %vm1053_vm5, %v3395_v1, %v3397_v58  ;;  %v3645_v54 = vpop.permute.xlu0 %3644  ;;  %3487 = vmatprep.mubr.f32.mxu1 %v5808_v21  ;;  %3558 = vmatprep.mubr.f32.mxu0 %v5808_v21 }
 0x379   :  { %4896 = vmatprep.subr.msk.mxu1 %vm80_vm1, %v3405_v48  ;;  %v3656_v25 = vsel %vm1306_vm6, %v3645_v54, %v3647_v11 }
 0x37b   :  { %v3393_v37 = vpop.permute.xlu1 %3392 }
 0x37c   :  { %v3404_v59 = vsel %vm1053_vm5, %v3393_v37, %v3395_v1  ;;  %v3899_v0 = vpop.permute.xlu0 %3898 }
 0x37d   :  { %4897 = vmatpush1.msk.msra.mxu1 %vm80_vm1, %v3404_v59 }
 0x37e   :  { %4898 = vmatmul.mubr.msk.f32.vlgmr.msra.gmra.mxu1 %vm77_vm2, %v5553_v46 }
 0x37f   :  { %v3399_v13 = vpop.permute.xlu1 %3398  ;;  %3629 = vmatprep.mubr.f32.mxu1 %v5808_v21 }
 0x380   :  { %v3406_v15 = vsel %vm1053_vm5, %v3397_v58, %v3399_v13  ;;  %v3407_v3 = vsel %vm1053_vm5, %v3399_v13, %v3401_v51  ;;  %v3655_v6 = vpop.permute.xlu0 %3654 }
 0x381   :  { %4899 = vmatprep.subr.msk.mxu0 %vm80_vm1, %v3407_v3 }
 0x382   :  { %4900 = vmatpush1.msk.msra.mxu0 %vm80_vm1, %v3406_v15 }
 0x383   :  { %v3403_v62 = vpop.permute.xlu1 %3402  ;;  %4901 = vmatmul.mubr.msk.f32.vlgmr.msra.gmra.mxu0 %vm77_vm2, %v5553_v46 }
 0x384   :  { %v3408_v7 = vsel %vm1053_vm5, %v3401_v51, %v3403_v62  ;;  %v3905_v17 = vpop.permute.xlu0 %3904  ;;  %4902 = vmatprep.subr.msk.mxu1 %vm80_vm1, %v3403_v62  ;;  %3739 = vmatprep.mubr.f32.mxu0 %v5808_v21 }
 0x385   :  { %4903 = vmatpush1.msk.msra.mxu1 %vm80_vm1, %v3408_v7 }
 0x386   :  { %4904 = vmatmul.mubr.msk.f32.vlgmr.msra.gmra.mxu1 %vm77_vm2, %v5553_v46 }
 0x387   :  { %v3649_v8 = vpop.permute.xlu1 %3648  ;;  %3810 = vmatprep.mubr.f32.mxu1 %v5808_v21 }
 0x388   :  { %v3657_v14 = vsel %vm1306_vm6, %v3647_v11, %v3649_v8  ;;  %v4151_v10 = vpop.permute.xlu0 %4150  ;;  %v3658_v20 = vsel %vm1306_vm6, %v3649_v8, %v3651_v50 }
 0x389   :  { %4905 = vmatprep.subr.msk.mxu0 %vm80_vm1, %v3657_v14 }
 0x38a   :  { %4906 = vmatpush1.msk.msra.mxu0 %vm80_vm1, %v3656_v25 }
 0x38b   :  { %v3653_v29 = vpop.permute.xlu1 %3652  ;;  %4907 = vmatmul.mubr.msk.f32.vlgmr.msra.gmra.mxu0 %vm77_vm2, %v5557_v34  ;;  %4911 = vmatprep.subr.msk.mxu0 %vm80_vm1, %v3655_v6 }
 0x38c   :  { %v3659_v46 = vsel %vm1306_vm6, %v3651_v50, %v3653_v29  ;;  %v3660_v16 = vsel %vm1306_vm6, %v3653_v29, %v3655_v6  ;;  %3881 = vmatprep.mubr.f32.mxu0 %v5808_v21  ;;  %v4155_v38 = vpop.permute.xlu0 %4154 }
 0x38d   :  { %4908 = vmatprep.subr.msk.mxu1 %vm80_vm1, %v3659_v46  ;;  %4912 = vmatpush1.msk.msra.mxu0 %vm80_vm1, %v3660_v16 }
 0x38e   :  { %4909 = vmatpush1.msk.msra.mxu1 %vm80_vm1, %v3658_v20 }
 0x38f   :  { %v3901_v32 = vpop.permute.xlu1 %3900  ;;  %4910 = vmatmul.mubr.msk.f32.vlgmr.msra.gmra.mxu1 %vm77_vm2, %v5557_v34  ;;  %4913 = vmatmul.mubr.msk.f32.vlgmr.msra.gmra.mxu0 %vm77_vm2, %v5557_v34 }
 0x390   :  { %v3909_v12 = vsel %vm1559_vm7, %v3899_v0, %v3901_v32  ;;  %3991 = vmatprep.mubr.f32.mxu1 %v5808_v21  ;;  %4062 = vmatprep.mubr.f32.mxu0 %v5808_v21  ;;  %v4149_v27 = vpop.permute.xlu0 %4148 }
 0x391   :  { %4914 = vmatprep.subr.msk.mxu1 %vm80_vm1, %v3909_v12  ;;  %v4160_v61 = vsel %vm1812_vm8, %v4149_v27, %v4151_v10 }
 0x393   :  { %v3897_v57 = vpop.permute.xlu1 %3896 }
 0x394   :  { %v3908_v35 = vsel %vm1559_vm7, %v3897_v57, %v3899_v0  ;;  %v4403_v28 = vpop.permute.xlu0 %4402 }
 0x395   :  { %4915 = vmatpush1.msk.msra.mxu1 %vm80_vm1, %v3908_v35 }
 0x396   :  { %4916 = vmatmul.mubr.msk.f32.vlgmr.msra.gmra.mxu1 %vm77_vm2, %v5559_v26 }
 0x397   :  { %v3903_v36 = vpop.permute.xlu1 %3902  ;;  %4133 = vmatprep.mubr.f32.mxu1 %v5808_v21 }
 0x398   :  { %v3910_v34 = vsel %vm1559_vm7, %v3901_v32, %v3903_v36  ;;  %v3911_v42 = vsel %vm1559_vm7, %v3903_v36, %v3905_v17  ;;  %v4159_v45 = vpop.permute.xlu0 %4158 }
 0x399   :  { %4917 = vmatprep.subr.msk.mxu0 %vm80_vm1, %v3911_v42 }
 0x39a   :  { %4918 = vmatpush1.msk.msra.mxu0 %vm80_vm1, %v3910_v34 }
 0x39b   :  { %v3907_v49 = vpop.permute.xlu1 %3906  ;;  %4919 = vmatmul.mubr.msk.f32.vlgmr.msra.gmra.mxu0 %vm77_vm2, %v5559_v26 }
 0x39c   :  { %v3912_v52 = vsel %vm1559_vm7, %v3905_v17, %v3907_v49  ;;  %4920 = vmatprep.subr.msk.mxu1 %vm80_vm1, %v3907_v49  ;;  %4243 = vmatprep.mubr.f32.mxu0 %v5808_v21  ;;  %v4409_v56 = vpop.permute.xlu0 %4408 }
 0x39d   :  { %4921 = vmatpush1.msk.msra.mxu1 %vm80_vm1, %v3912_v52 }
 0x39e   :  { %4922 = vmatmul.mubr.msk.f32.vlgmr.msra.gmra.mxu1 %vm77_vm2, %v5559_v26 }
 0x39f   :  { %v4153_v44 = vpop.permute.xlu1 %4152  ;;  %4314 = vmatprep.mubr.f32.mxu1 %v5808_v21 }
 0x3a0   :  { %v4161_v53 = vsel %vm1812_vm8, %v4151_v10, %v4153_v44  ;;  %v4162_v43 = vsel %vm1812_vm8, %v4153_v44, %v4155_v38 }
 0x3a1   :  { %4923 = vmatprep.subr.msk.mxu0 %vm80_vm1, %v4161_v53 }
 0x3a2   :  { %4924 = vmatpush1.msk.msra.mxu0 %vm80_vm1, %v4160_v61 }
 0x3a3   :  { %v4157_v63 = vpop.permute.xlu1 %4156  ;;  %4925 = vmatmul.mubr.msk.f32.vlgmr.msra.gmra.mxu0 %vm77_vm2, %v5563_v9  ;;  %4929 = vmatprep.subr.msk.mxu0 %vm80_vm1, %v4159_v45 }
 0x3a4   :  { %v4163_v26 = vsel %vm1812_vm8, %v4155_v38, %v4157_v63  ;;  %v4164_v1 = vsel %vm1812_vm8, %v4157_v63, %v4159_v45  ;;  %4385 = vmatprep.mubr.f32.mxu0 %v5808_v21 }
 0x3a5   :  { %4926 = vmatprep.subr.msk.mxu1 %vm80_vm1, %v4163_v26  ;;  %4930 = vmatpush1.msk.msra.mxu0 %vm80_vm1, %v4164_v1  ;;  %v4651_v1 = vpop.permute.xlu0 %4650 }
 0x3a6   :  { %4927 = vmatpush1.msk.msra.mxu1 %vm80_vm1, %v4162_v43 }
 0x3a7   :  { %v4405_v18 = vpop.permute.xlu1 %4404  ;;  %4928 = vmatmul.mubr.msk.f32.vlgmr.msra.gmra.mxu1 %vm77_vm2, %v5563_v9  ;;  %4931 = vmatmul.mubr.msk.f32.vlgmr.msra.gmra.mxu0 %vm77_vm2, %v5563_v9 }
 0x3a8   :  { %v4413_v55 = vsel %vm2065_vm9, %v4403_v28, %v4405_v18  ;;  %4495 = vmatprep.mubr.f32.mxu1 %v5808_v21  ;;  %4566 = vmatprep.mubr.f32.mxu0 %v5808_v21 }
 0x3a9   :  { %4932 = vmatprep.subr.msk.mxu1 %vm80_vm1, %v4413_v55 }
 0x3ab   :  { %v4401_v4 = vpop.permute.xlu1 %4400 }
 0x3ac   :  { %v4412_v23 = vsel %vm2065_vm9, %v4401_v4, %v4403_v28 }
 0x3ad   :  { %4933 = vmatpush1.msk.msra.mxu1 %vm80_vm1, %v4412_v23 }
 0x3ae   :  { %4934 = vmatmul.mubr.msk.f32.vlgmr.msra.gmra.mxu1 %vm77_vm2, %v5567_v31 }
 0x3af   :  { %v4407_v51 = vpop.permute.xlu1 %4406  ;;  %4637 = vmatprep.mubr.f32.mxu1 %v5808_v21 }
 0x3b0   :  { %v4414_v9 = vsel %vm2065_vm9, %v4405_v18, %v4407_v51  ;;  %v4415_v5 = vsel %vm2065_vm9, %v4407_v51, %v4409_v56 }
 0x3b1   :  { %4935 = vmatprep.subr.msk.mxu0 %vm80_vm1, %v4415_v5 }
 0x3b2   :  { %4936 = vmatpush1.msk.msra.mxu0 %vm80_vm1, %v4414_v9 }
 0x3b3   :  { %v4411_v24 = vpop.permute.xlu1 %4410  ;;  %4937 = vmatmul.mubr.msk.f32.vlgmr.msra.gmra.mxu0 %vm77_vm2, %v5567_v31 }
 0x3b4   :  { %v4416_v11 = vsel %vm2065_vm9, %v4409_v56, %v4411_v24  ;;  %4938 = vmatprep.subr.msk.mxu1 %vm80_vm1, %v4411_v24 }
 0x3b5   :  { %4939 = vmatpush1.msk.msra.mxu1 %vm80_vm1, %v4416_v11 }
 0x3b6   :  { %4940 = vmatmul.mubr.msk.f32.vlgmr.msra.gmra.mxu1 %vm77_vm2, %v5567_v31  ;;  %vm4772_vm2 = vcmask 64516  }
 0x3b7   :  { %v4653_v23 = vpop.permute.xlu1 %4652  ;;  %vm4773_vm3 = vmor %vm4772_vm2, %vm80_vm1 }
 0x416   :  { %v2510_v60 = vpop.f32.mrf.mxu1 }
 0x418   :  { %v2512_v22 = vpop.f32.mrf.mxu1 }
 0x41b   :  { %v2581_v21 = vpop.f32.mrf.mxu0 }
 0x41d   :  { %v2583_v19 = vpop.f32.mrf.mxu0 }
 0x41e   :  { %v2652_v47 = vpop.f32.mrf.mxu1 }
 0x41f   :  { %v2739_v50 = vpop.f32.mrf.mxu0 }
 0x420   :  { %v2654_v2 = vpop.f32.mrf.mxu1  ;;  %v2740_v28 = vadd.f32 %v2739_v50, %v2510_v60 }
 0x421   :  { %v2741_v58 = vpop.f32.mrf.mxu0 }
 0x422   :  { %v2810_v48 = vpop.f32.mrf.mxu1  ;;  %v2742_v44 = vadd.f32 %v2741_v58, %v2512_v22 }
 0x423   :  { %v2881_v54 = vpop.f32.mrf.mxu0  ;;  %v2811_v43 = vadd.f32 %v2810_v48, %v2581_v21 }
 0x424   :  { %v2812_v37 = vpop.f32.mrf.mxu1  ;;  %v2882_v5 = vadd.f32 %v2881_v54, %v2652_v47 }
 0x425   :  { %v2883_v59 = vpop.f32.mrf.mxu0  ;;  %v2813_v56 = vadd.f32 %v2812_v37, %v2583_v19 }
 0x426   :  { %v2985_v13 = vpop.f32.mrf.mxu1  ;;  %v2884_v50 = vadd.f32 %v2883_v59, %v2654_v2  ;;  %v4662_v2 = vsel %vm1053_vm5, %v4651_v1, %v4653_v23 }
 0x427   :  { %v3132_v53 = vadd.f32 %v2985_v13, %v2740_v28  ;;  %v4655_v28 = vpop.permute.xlu0 %4654 }
 0x428   :  { %v2987_v3 = vpop.f32.mrf.mxu1 }
 0x429   :  { %v3133_v45 = vadd.f32 %v2987_v3, %v2742_v44 }
 0x42b   :  { %v3056_v0 = vpop.f32.mrf.mxu0 }
 0x42c   :  { %v3134_v51 = vadd.f32 %v3056_v0, %v2811_v43  ;;  %v4657_v0 = vpop.permute.xlu1 %4656 }
 0x42d   :  { %v3058_v15 = vpop.f32.mrf.mxu0 }
 0x42e   :  { %v3127_v62 = vpop.f32.mrf.mxu1  ;;  %v3135_v22 = vadd.f32 %v3058_v15, %v2813_v56 }
 0x42f   :  { %v3136_v13 = vadd.f32 %v3127_v62, %v2882_v5 }
 0x430   :  { %v3129_v31 = vpop.f32.mrf.mxu1  ;;  %v4661_v1 = vpop.permute.xlu1 %4660 }
 0x431   :  { %v3137_v44 = vadd.f32 %v3129_v31, %v2884_v50 }
 0x433   :  { %v3237_v6 = vpop.f32.mrf.mxu0 }
 0x434   :  { %v3384_v63 = vadd.f32 %v3237_v6, %v3132_v53 }
 0x435   :  { %v3239_v7 = vpop.f32.mrf.mxu0 }
 0x436   :  { %v3385_v55 = vadd.f32 %v3239_v7, %v3133_v45 }
 0x437   :  { %v3308_v17 = vpop.f32.mrf.mxu1  ;;  %v3379_v8 = vpop.f32.mrf.mxu0 }
 0x438   :  { %v3386_v58 = vadd.f32 %v3308_v17, %v3134_v51 }
 0x439   :  { %v3310_v14 = vpop.f32.mrf.mxu1  ;;  %v3381_v25 = vpop.f32.mrf.mxu0 }
 0x43a   :  { %v3387_v21 = vadd.f32 %v3310_v14, %v3135_v22  ;;  %v3389_v47 = vadd.f32 %v3381_v25, %v3137_v44 }
 0x43e   :  { %v3489_v10 = vpop.f32.mrf.mxu1 }
 0x43f   :  { %v3636_v4 = vadd.f32 %v3489_v10, %v3384_v63  ;;  %v3388_v10 = vadd.f32 %v3379_v8, %v3136_v13  ;;  %v4663_v8 = vsel %vm1053_vm5, %v4653_v23, %v4655_v28 }
 0x440   :  { %v3491_v46 = vpop.f32.mrf.mxu1 }
 0x441   :  { %v3637_v24 = vadd.f32 %v3491_v46, %v3385_v55 }
 0x443   :  { %v3560_v29 = vpop.f32.mrf.mxu0 }
 0x444   :  { %v3638_v48 = vadd.f32 %v3560_v29, %v3386_v58 }
 0x445   :  { %v3562_v16 = vpop.f32.mrf.mxu0 }
 0x446   :  { %v3631_v20 = vpop.f32.mrf.mxu1  ;;  %v3639_v54 = vadd.f32 %v3562_v16, %v3387_v21  ;;  %v4659_v16 = vpop.permute.xlu0 %4658 }
 0x447   :  { %v3640_v59 = vadd.f32 %v3631_v20, %v3388_v10 }
 0x448   :  { %v3633_v38 = vpop.f32.mrf.mxu1 }
 0x449   :  { %v3641_v17 = vadd.f32 %v3633_v38, %v3389_v47 }
 0x44b   :  { %v3741_v32 = vpop.f32.mrf.mxu0 }
 0x44c   :  { %v3888_v11 = vadd.f32 %v3741_v32, %v3636_v4  ;;  %v4665_v4 = vsel %vm1053_vm5, %v4657_v0, %v4659_v16 }
 0x44d   :  { %v3743_v12 = vpop.f32.mrf.mxu0 }
 0x44e   :  { %v3889_v3 = vadd.f32 %v3743_v12, %v3637_v24 }
 0x44f   :  { %v3812_v57 = vpop.f32.mrf.mxu1  ;;  %v3883_v35 = vpop.f32.mrf.mxu0 }
 0x450   :  { %v3890_v46 = vadd.f32 %v3812_v57, %v3638_v48  ;;  %v3892_v12 = vadd.f32 %v3883_v35, %v3640_v59 }
 0x451   :  { %v3814_v27 = vpop.f32.mrf.mxu1  ;;  %v3885_v34 = vpop.f32.mrf.mxu0 }
 0x452   :  { %v3891_v31 = vadd.f32 %v3814_v27, %v3639_v54  ;;  %v3893_v57 = vadd.f32 %v3885_v34, %v3641_v17  ;;  %v4664_v27 = vsel %vm1053_vm5, %v4655_v28, %v4657_v0 }
 0x456   :  { %v3993_v36 = vpop.f32.mrf.mxu1 }
 0x457   :  { %v4140_v6 = vadd.f32 %v3993_v36, %v3888_v11 }
 0x458   :  { %v3995_v49 = vpop.f32.mrf.mxu1 }
 0x459   :  { %v4141_v53 = vadd.f32 %v3995_v49, %v3889_v3 }
 0x45b   :  { %v4064_v42 = vpop.f32.mrf.mxu0 }
 0x45c   :  { %v4142_v14 = vadd.f32 %v4064_v42, %v3890_v46 }
 0x45d   :  { %v4066_v61 = vpop.f32.mrf.mxu0 }
 0x45e   :  { %v4135_v52 = vpop.f32.mrf.mxu1  ;;  %v4143_v45 = vadd.f32 %v4066_v61, %v3891_v31 }
 0x45f   :  { %v4144_v20 = vadd.f32 %v4135_v52, %v3892_v12  ;;  %v5011_v12 = vmov 74  }
 0x460   :  { %v4137_v18 = vpop.f32.mrf.mxu1  ;;  %4973 = vset.pattern.permute.xlu0 %v5011_v12 }
 0x461   :  { %v4145_v43 = vadd.f32 %v4137_v18, %v3893_v57  ;;  %v4666_v18 = vsel %vm1053_vm5, %v4659_v16, %v4661_v1 }
 0x463   :  { %v4245_v26 = vpop.f32.mrf.mxu0 }
 0x464   :  { %v4392_v19 = vadd.f32 %v4245_v26, %v4140_v6 }
 0x465   :  { %v4247_v60 = vpop.f32.mrf.mxu0 }
 0x466   :  { %v4393_v15 = vadd.f32 %v4247_v60, %v4141_v53 }
 0x467   :  { %v4316_v9 = vpop.f32.mrf.mxu1  ;;  %v4387_v37 = vpop.f32.mrf.mxu0 }
 0x468   :  { %v4394_v63 = vadd.f32 %v4316_v9, %v4142_v14  ;;  %v4396_v23 = vadd.f32 %v4387_v37, %v4144_v20 }
 0x469   :  { %v4318_v7 = vpop.f32.mrf.mxu1  ;;  %v4389_v36 = vpop.f32.mrf.mxu0 }
 0x46a   :  { %v4395_v35 = vadd.f32 %v4318_v7, %v4143_v45  ;;  %v4397_v11 = vadd.f32 %v4389_v36, %v4145_v43  ;;  %v5012_v36 = vmov 75  }
 0x46b   :  { %4974 = vset.pattern.permute.xlu1 %v5012_v36 }
 0x46e   :  { %v4497_v32 = vpop.f32.mrf.mxu1 }
 0x46f   :  { %v5747_v62 = vadd.f32 %v4497_v32, %v4392_v19 }
 0x470   :  { %v4499_v29 = vpop.f32.mrf.mxu1 }
 0x471   :  { %v4673_v49 = vmul.f32 %v4662_v2, %v5747_v62  ;;  %v5751_v25 = vadd.f32 %v4499_v29, %v4393_v15 }
 0x473   :  { %v4693_v26 = vmul.f32 %v4673_v49, %v5747_v62  ;;  %v4674_v38 = vmul.f32 %v4663_v8, %v5751_v25  ;;  %v4568_v42 = vpop.f32.mrf.mxu0  ;;  %v4679_v34 = vsel %vm80_vm1, %v4673_v49, 0.0  ;;  %v4983_v49 = vld [vmem:[%s5801_s2] sm:$0xf] }
 0x474   :  { %v5756_v55 = vadd.f32 %v4568_v42, %v4394_v63 }
 0x475   :  { %v4680_v61 = vsel %vm80_vm1, %v4674_v38, 0.0  ;;  %v4694_v52 = vmul.f32 %v4674_v38, %v5751_v25  ;;  %v4570_v56 = vpop.f32.mrf.mxu0  ;;  %v4699_v60 = vsel %vm80_vm1, %v4693_v26, 0.0 }
 0x476   :  { %v4681_v51 = vadd.f32 %v4680_v61, %v4679_v34  ;;  %v4675_v9 = vmul.f32 %v4664_v27, %v5756_v55  ;;  %v5763_v5 = vadd.f32 %v4570_v56, %v4395_v35  ;;  %v4639_v24 = vpop.f32.mrf.mxu1 }
 0x477   :  { %v4700_v50 = vsel %vm80_vm1, %v4694_v52, 0.0  ;;  %v4648_v22 = vadd.f32 %v4639_v24, %v4396_v23 }
 0x478   :  { %v4701_v58 = vadd.f32 %v4700_v50, %v4699_v60  ;;  %v4682_v13 = vsel %vm80_vm1, %v4675_v9, 0.0  ;;  %v4695_v3 = vmul.f32 %v4675_v9, %v5756_v55  ;;  %v4676_v6 = vmul.f32 %v4665_v4, %v5763_v5  ;;  %v4641_v28 = vpop.f32.mrf.mxu1 }
 0x479   :  { %v4683_v44 = vadd.f32 %v4682_v13, %v4681_v51  ;;  %v4677_v21 = vmul.f32 %v4666_v18, %v4648_v22  ;;  %v4649_v48 = vadd.f32 %v4641_v28, %v4397_v11  ;;  %v5809_v28 = vld [vmem:[#allocation2_spill] sm:$0xff] }
 0x47a   :  { %v4702_v7 = vsel %vm80_vm1, %v4695_v3, 0.0  ;;  %v4684_v10 = vsel %vm80_vm1, %v4676_v6, 0.0  ;;  %v4696_v53 = vmul.f32 %v4676_v6, %v5763_v5 }
 0x47b   :  { %v4703_v19 = vadd.f32 %v4702_v7, %v4701_v58  ;;  %v4685_v37 = vadd.f32 %v4684_v10, %v4683_v44  ;;  %v4686_v0 = vsel %vm80_vm1, %v4677_v21, 0.0  ;;  %v4697_v47 = vmul.f32 %v4677_v21, %v4648_v22 }
 0x47c   :  { %v4704_v54 = vsel %vm80_vm1, %v4696_v53, 0.0  ;;  %v4678_v46 = vmul.f32 %v4661_v1, %v4649_v48 }
 0x47d   :  { %v4705_v32 = vadd.f32 %v4704_v54, %v4703_v19  ;;  %v4687_v2 = vadd.f32 %v4686_v0, %v4685_v37  ;;  %v4706_v59 = vsel %vm80_vm1, %v4697_v47, 0.0 }
 0x47e   :  { %v4698_v15 = vmul.f32 %v4678_v46, %v4649_v48  ;;  %v4689_v17 = vsel %vm4688_vm0, %v4678_v46, 0.0 }
 0x47f   :  { %v4690_v31 = vadd.f32 %v4689_v17, %v4687_v2  ;;  %v4707_v14 = vadd.f32 %v4706_v59, %v4705_v32 }
 0x480   :  { %v4708_v29 = vsel %vm4688_vm0, %v4698_v15, 0.0 }
 0x481   :  { %4691 = vadd.xlane.f32.xlu0 %v4690_v31  ;;  %v4709_v8 = vadd.f32 %v4708_v29, %v4707_v14 }
 0x483   :  { %4710 = vadd.xlane.f32.xlu1 %v4709_v8 }
 0x494   :  { %4737 = vperm.xlu1 %4974, %v4983_v49  }
 0x50a   :  { %v4692_v16 = vpop.xlane.xlu0 %4691 }
 0x50b   :  { %v4712_v57 = vmul.f32 0.001953125, %v4692_v16 }
 0x50c   :  { %v4711_v45 = vpop.xlane.xlu1 %4710 }
 0x50d   :  { %v4713_v63 = vmul.f32 0.001953125, %v4711_v45  ;;  %v4714_v20 = vmul.f32 %v4712_v57, %v4712_v57  ;;  %v4718_v1 = vsub.f32 %v5747_v62, %v4712_v57  ;;  %v4719_v43 = vsub.f32 %v5751_v25, %v4712_v57 }
 0x50e   :  { %v4720_v35 = vsub.f32 %v5756_v55, %v4712_v57  ;;  %v4721_v4 = vsub.f32 %v5763_v5, %v4712_v57  ;;  %v4722_v23 = vsub.f32 %v4648_v22, %v4712_v57  ;;  %v4723_v34 = vsub.f32 %v4649_v48, %v4712_v57 }
 0x50f   :  { %v4715_v26 = vsub.f32 %v4713_v63, %v4714_v20 }
 0x510   :  { %v4738_v52 = vpop.permute.xlu1 %4737 }
 0x511   :  { %v4716_v38 = vadd.f32 1e-05, %v4715_v26 }
 0x513   :  { %4981 = vrsqrt.f32 %v4716_v38 }
 0x520   :  { %v4982_v27 = vpop.eup %4981 }
 0x521   :  { %v4724_v42 = vmul.f32 %v4983_v49, %v4982_v27 }
 0x523   :  { %4727 = vperm.xlu0 %4973, %v4724_v42  }
 0x527   :  { %4975 = vset.pattern.permute.xlu0 %v5012_v36 }
 0x59e   :  { %v4728_v61 = vpop.permute.xlu0 %4727 }
 0x59f   :  { %v4730_v56 = vmul.f32 %v4728_v61, %v4718_v1  ;;  %v4731_v51 = vmul.f32 %v4728_v61, %v4719_v43  ;;  %v4732_v9 = vmul.f32 %v4728_v61, %v4720_v35  ;;  %v4733_v24 = vmul.f32 %v4728_v61, %v4721_v4 }
 0x5a0   :  { %v4734_v18 = vmul.f32 %v4728_v61, %v4722_v23  ;;  %v4735_v11 = vmul.f32 %v4728_v61, %v4723_v34 }
 0x5a1   :  { %v4740_v60 = vadd.f32 %v4738_v52, %v4730_v56  ;;  %v4741_v50 = vadd.f32 %v4738_v52, %v4731_v51  ;;  %v4742_v58 = vadd.f32 %v4738_v52, %v4732_v9  ;;  %v4743_v62 = vadd.f32 %v4738_v52, %v4733_v24 }
 0x5a2   :  { %v4744_v25 = vadd.f32 %v4738_v52, %v4734_v18  ;;  %v4745_v13 = vadd.f32 %v4738_v52, %v4735_v11 }
 0x5a3   :  { %v4752_v55 = vadd.f32 %v4740_v60, %v5313_v33  ;;  %v4753_v5 = vadd.f32 %v4741_v50, %v5308_v30  ;;  %v4754_v22 = vadd.f32 %v4742_v58, %v5336_v41  ;;  %v4755_v3 = vadd.f32 %v4743_v62, %v5327_v39 }
 0x5a4   :  { %v4756_v6 = vadd.f32 %v4744_v25, %v5331_v40  ;;  %v4757_v44 = vadd.f32 %v4745_v13, %v5809_v28 }
 0x5a5   :  { %v4764_v21 = vcombine.low %v4752_v55, %v4753_v5  ;;  %v4765_v48 = vcombine.low %v4754_v22, %v4755_v3 }
 0x5a6   :  { %v4766_v7 = vcombine.low %v4756_v6, %v4757_v44 }
 0x5a7   :  { %4770 = vst [vmem:[%s5803_s3] sm:$0xff] %v4764_v21  ;;  %4771 = vst [vmem:[%s5803_s3 + $0x8] sm:$0xff] %v4765_v48 }
 0x5a8   :  { %4774 = vst.msk [vmem:[%s5803_s3 + $0x10] sm:$0xff] %vm4773_vm3, %v4766_v7 }

</bundles_post_ra>
